<compile_context>
chip_gen: v6e
topology: v6e:2x2x1
jax: 0.10.0
libtpu: 0.0.40
codegen_flags: <defaults>
</compile_context>

<pallas_src>
import math

import jax
import jax.numpy as jnp
from jax.experimental import pallas as pl
from jax.experimental.pallas import tpu as pltpu

# ------------------------- model hyper-parameters (small) -------------------------
B = 2              # batch
S = 8              # sequence length
H = 32             # roberta hidden size
NUM_HEADS = 4
HEAD_DIM = H // NUM_HEADS
FFN = 4 * H        # 128
NUM_LAYERS = 2
NUM_NUM_FEATS = 4  # num_numerical_features
NUM_LABELS = 2
VOCAB = 64
ALPHA = 0.75
GAMMA = 2.0        # focal-loss gamma (hard-coded as squaring below)
LN_EPS = 1e-5
BN_EPS = 1e-5

BS = B * S                      # 16 flattened tokens
PK = NUM_HEADS * BS             # 64 packed score columns (head-major)

# packed per-layer vector slab rows (shape [L, 8, FFN]):
#   0: [bq*scale|bk|bv] (3H lanes)  1: b1 (FFN)  2: bo  3: ln1_g  4: ln1_b
#   5: b2                            6: ln2_g     7: ln2_b
# packed head vector slab rows (shape [3, 128]) -- BN already folded in:
#   0: fc1.b'   1: fc2.b' (64 lanes)   2: fc3.b (NUM_LABELS lanes)


# ---------------------------------- helpers ----------------------------------
def _layer_norm(x, g, b):
    mu = jnp.mean(x, axis=-1, keepdims=True)
    var = jnp.mean((x - mu) * (x - mu), axis=-1, keepdims=True)
    return (x - mu) * jax.lax.rsqrt(var + LN_EPS) * g + b


def _gelu(x):
    # tanh approximation of GELU (close to RoBERTa's erf-GELU)
    c = math.sqrt(2.0 / math.pi)
    return 0.5 * x * (1.0 + jnp.tanh(c * (x + 0.044715 * x * x * x)))


# ------------------------- single fused forward kernel -------------------------
def fused_forward_kernel(x0_ref, bias_ref, nf_ref, labels_ref,
                         t2_ref, hmask_ref, ones_blk_ref, sel_ref,
                         wqkv_ref, wo_ref, w1_ref, w2_ref, vec_ref,
                         hw1_ref, hw2_ref, hw3_ref, hvec_ref,
                         out_ref):
    x = x0_ref[...]                 # [BS, H] running activations (stays in vregs)
    bias_t = bias_ref[...]          # [BS, PK] head-tiled block-diagonal bias
    t2 = t2_ref[...]                # [PK, BS] key/value expansion matrix
    hmask = hmask_ref[...]          # [PK, H]  per-packed-column head mask
    ones_blk = ones_blk_ref[...]    # [PK, PK] block-diagonal ones (denominators)

    # ----------------------- encoder layers (static loop) -----------------------
    for l in range(NUM_LAYERS):
        vec = vec_ref[l]                                            # [8, FFN]

        # fused QKV projection (scale already folded into the Q columns)
        qkv = jnp.dot(x, wqkv_ref[l], preferred_element_type=jnp.float32) \
            + vec[0:1, 0:3 * H]
        q = qkv[:, 0:H]
        k = qkv[:, H:2 * H]
        v = qkv[:, 2 * H:3 * H]

        # expand keys/values to head-packed layout: [PK, H]
        k_exp = jnp.dot(t2, k, preferred_element_type=jnp.float32) * hmask
        v_exp = jnp.dot(t2, v, preferred_element_type=jnp.float32) * hmask

        # all-head scores packed along lanes: [BS, PK]
        s = jax.lax.dot_general(q, k_exp, (((1,), (1,)), ((), ())),
                                preferred_element_type=jnp.float32) + bias_t
        s = s - jnp.max(s, axis=-1, keepdims=True)      # one row-max stabilizer
        p = jnp.exp(s)                                  # one exp over all heads
        denom = jnp.dot(p, ones_blk, preferred_element_type=jnp.float32)
        p = p * pl.reciprocal(denom, approx=True)
        ctx = jnp.dot(p, v_exp, preferred_element_type=jnp.float32)   # [BS, H]

        attn = jnp.dot(ctx, wo_ref[l], preferred_element_type=jnp.float32) \
            + vec[2:3, 0:H]
        h1 = _layer_norm(x + attn, vec[3:4, 0:H], vec[4:5, 0:H])

        ff = jnp.dot(h1, w1_ref[l], preferred_element_type=jnp.float32) \
            + vec[1:2, :]
        ff = _gelu(ff)
        ff = jnp.dot(ff, w2_ref[l], preferred_element_type=jnp.float32) \
            + vec[5:6, 0:H]
        x = _layer_norm(h1 + ff, vec[6:7, 0:H], vec[7:8, 0:H])

    # --------------------------------- MLP head ---------------------------------
    # CLS rows via constant selection matmul (no gather / concat needed)
    cls = jnp.dot(sel_ref[...], x, preferred_element_type=jnp.float32)   # [B, H]

    hvec = hvec_ref[...]                                                 # [3, 128]

    # dropout(p=0.3) is identity in eval mode.
    # fc1(+BN1 folded) over [cls | numerical_features] as a split matmul
    z = (jnp.dot(cls, hw1_ref[0:H, :], preferred_element_type=jnp.float32)
         + jnp.dot(nf_ref[...], hw1_ref[H:H + NUM_NUM_FEATS, :],
                   preferred_element_type=jnp.float32)
         + hvec[0:1, :])
    z = jnp.where(z > 0, z, 0.1 * z)                                     # LeakyReLU(0.1)

    # fc2 (+BN2 folded), ReLU
    z = jnp.dot(z, hw2_ref[...], preferred_element_type=jnp.float32) \
        + hvec[1:2, 0:64]
    z = jnp.maximum(z, 0.0)

    # fc3 (weight padded to 128 lanes host-side -> logits_full[:, 2:] == 0)
    logits_full = jnp.dot(z, hw3_ref[...], preferred_element_type=jnp.float32) \
        + hvec[2:3, :]                                                   # [B, 128]
    logits = logits_full[:, 0:NUM_LABELS]                                # [B, 2]

    # WeightedFocalLoss (class_weights are stored but unused in the reference).
    # Exact division here (loss accuracy matters; approx recip kept for attention).
    labels = labels_ref[...]                                             # [B, 1] int32
    mx = jnp.max(logits, axis=1, keepdims=True)
    e = jnp.exp(logits - mx)
    probs = e / jnp.sum(e, axis=1, keepdims=True)
    classes = jax.lax.broadcasted_iota(jnp.int32, (B, NUM_LABELS), 1)
    one_hot = (classes == labels).astype(jnp.float32)
    pt = jnp.sum(probs * one_hot, axis=1, keepdims=True)                 # [B, 1]
    alpha_t = jnp.where(labels == 1, ALPHA, 1.0 - ALPHA)
    om = 1.0 - pt
    loss_vec = -alpha_t * (om * om) * jnp.log(pt + 1e-8)                 # gamma = 2.0
    loss2d = jnp.sum(loss_vec, axis=0, keepdims=True) / float(B)         # [1, 1]

    # lane-dense merged output slab: rows 0..B-1 = padded logits, rows B.. = loss
    out_ref[0:B, :] = logits_full
    out_ref[B:, :] = jnp.broadcast_to(loss2d, (8 - B, 128))


def fused_forward(x0, bias_tiled, nf, labels, consts, params):
    t2, hmask, ones_blk, sel = consts
    return pl.pallas_call(
        fused_forward_kernel,
        out_shape=jax.ShapeDtypeStruct((8, 128), jnp.float32),
    )(x0, bias_tiled, nf, labels,
      t2, hmask, ones_blk, sel,
      params["wqkv"], params["wo"], params["w1"], params["w2"], params["vec"],
      params["hw1"], params["hw2"], params["hw3"], params["hvec"])


# ------------------------------ JAX glue (embeddings) ------------------------------
def embed(params, input_ids):
    we = params["word_emb"][input_ids]                    # [B, S, H]
    pe = params["pos_emb"][jnp.arange(S)]                 # [S, H]
    te = params["type_emb"][0]                            # [H]
    emb = we + pe[None, :, :] + te[None, None, :]
    mu = emb.mean(-1, keepdims=True)
    var = ((emb - mu) ** 2).mean(-1, keepdims=True)
    return (emb - mu) / jnp.sqrt(var + LN_EPS) * params["emb_ln_g"] + params["emb_ln_b"]


def _attention_constants():
    c = jnp.arange(PK, dtype=jnp.int32)
    # expansion matrix: packed column c selects key/value row c % BS
    t2 = (c[:, None] % BS == jnp.arange(BS, dtype=jnp.int32)[None, :]).astype(jnp.float32)
    # head mask over hidden lanes: packed column c belongs to head c // BS
    hmask = (jnp.arange(H, dtype=jnp.int32)[None, :] // HEAD_DIM
             == c[:, None] // BS).astype(jnp.float32)                    # [PK, H]
    # block-diagonal ones (per-head softmax denominators)
    ones_blk = (c[:, None] // BS == c[None, :] // BS).astype(jnp.float32)  # [PK, PK]
    # CLS selection matrix
    sel = (jnp.arange(BS, dtype=jnp.int32)[None, :]
           == (jnp.arange(B, dtype=jnp.int32) * S)[:, None]).astype(jnp.float32)  # [B, BS]
    return t2, hmask, ones_blk, sel


def roberta_with_numerical_features(params, input_ids, attention_mask,
                                    numerical_features, labels):
    emb = embed(params, input_ids)                        # [B, S, H]
    x0 = emb.reshape(BS, H)

    # Block-diagonal additive attention bias over the flattened [B*S] tokens,
    # tiled NUM_HEADS times along lanes to match the head-packed score layout.
    key_bias = (attention_mask.reshape(-1).astype(jnp.float32) - 1.0) * 1e9
    tok_batch = jnp.arange(BS, dtype=jnp.int32) // S
    same_batch = tok_batch[:, None] == tok_batch[None, :]
    bias_full = jnp.where(same_batch, key_bias[None, :], -1e9).astype(jnp.float32)
    bias_tiled = jnp.tile(bias_full, (1, NUM_HEADS))      # [BS, PK]

    consts = _attention_constants()
    out = fused_forward(x0, bias_tiled,
                        numerical_features.astype(jnp.float32),
                        labels.reshape(B, 1).astype(jnp.int32),
                        consts, params)
    logits = out[:B, :NUM_LABELS]
    loss = out[B, 0]
    return loss, logits


# ----------------------------- deterministic params -----------------------------
def init_params(key):
    ks = iter(jax.random.split(key, 64))

    def n(shape, scale=0.02):
        return (scale * jax.random.normal(next(ks), shape)).astype(jnp.float32)

    def pad_row(v, width):
        return jnp.pad(v, ((0, 0), (0, width - v.shape[1])))

    params = {
        "word_emb": n((VOCAB, H)),
        "pos_emb": n((S, H)),
        "type_emb": n((1, H)),
        "emb_ln_g": jnp.ones((H,), jnp.float32),
        "emb_ln_b": jnp.zeros((H,), jnp.float32),
    }

    attn_scale = 1.0 / math.sqrt(HEAD_DIM)
    wqkv, wo, w1, w2, vec = [], [], [], [], []
    for _ in range(NUM_LAYERS):
        lw = {"wq": n((H, H)), "bq": jnp.zeros((1, H), jnp.float32),
              "wk": n((H, H)), "bk": jnp.zeros((1, H), jnp.float32),
              "wv": n((H, H)), "bv": jnp.zeros((1, H), jnp.float32),
              "wo": n((H, H)), "bo": jnp.zeros((1, H), jnp.float32),
              "ln1_g": jnp.ones((1, H), jnp.float32),
              "ln1_b": jnp.zeros((1, H), jnp.float32),
              "w1": n((H, FFN)), "b1": jnp.zeros((1, FFN), jnp.float32),
              "w2": n((FFN, H)), "b2": jnp.zeros((1, H), jnp.float32),
              "ln2_g": jnp.ones((1, H), jnp.float32),
              "ln2_b": jnp.zeros((1, H), jnp.float32)}
        # fold 1/sqrt(head_dim) into the Q projection
        wqkv.append(jnp.concatenate([lw["wq"] * attn_scale, lw["wk"], lw["wv"]], axis=1))
        wo.append(lw["wo"])
        w1.append(lw["w1"])
        w2.append(lw["w2"])
        vec.append(jnp.concatenate([
            pad_row(jnp.concatenate([lw["bq"] * attn_scale, lw["bk"], lw["bv"]],
                                    axis=1), FFN),
            lw["b1"],
            pad_row(lw["bo"], FFN), pad_row(lw["ln1_g"], FFN), pad_row(lw["ln1_b"], FFN),
            pad_row(lw["b2"], FFN), pad_row(lw["ln2_g"], FFN), pad_row(lw["ln2_b"], FFN),
        ], axis=0))
    params["wqkv"] = jnp.stack(wqkv)   # [L, H, 3H]
    params["wo"] = jnp.stack(wo)       # [L, H, H]
    params["w1"] = jnp.stack(w1)       # [L, H, FFN]
    params["w2"] = jnp.stack(w2)       # [L, FFN, H]
    params["vec"] = jnp.stack(vec)     # [L, 8, FFN]

    head = {"w1": n((H + NUM_NUM_FEATS, 128)), "b1": jnp.zeros((1, 128), jnp.float32),
            "bn1_g": jnp.ones((1, 128), jnp.float32), "bn1_b": jnp.zeros((1, 128), jnp.float32),
            "bn1_rm": jnp.zeros((1, 128), jnp.float32), "bn1_rv": jnp.ones((1, 128), jnp.float32),
            "w2": n((128, 64)), "b2": jnp.zeros((1, 64), jnp.float32),
            "bn2_g": jnp.ones((1, 64), jnp.float32), "bn2_b": jnp.zeros((1, 64), jnp.float32),
            "bn2_rm": jnp.zeros((1, 64), jnp.float32), "bn2_rv": jnp.ones((1, 64), jnp.float32),
            "w3": n((64, NUM_LABELS)), "b3": jnp.zeros((1, NUM_LABELS), jnp.float32)}

    # fold eval-mode BatchNorms into the preceding linear layers
    bn1_scale = head["bn1_g"] / jnp.sqrt(head["bn1_rv"] + BN_EPS)
    bn1_shift = head["bn1_b"] - head["bn1_rm"] * bn1_scale
    bn2_scale = head["bn2_g"] / jnp.sqrt(head["bn2_rv"] + BN_EPS)
    bn2_shift = head["bn2_b"] - head["bn2_rm"] * bn2_scale

    params["hw1"] = head["w1"] * bn1_scale                 # [H+NF, 128]
    params["hw2"] = head["w2"] * bn2_scale                 # [128, 64]
    params["hw3"] = pad_row(head["w3"], 128)               # [64, 128] (padded lanes)
    params["hvec"] = jnp.concatenate([
        head["b1"] * bn1_scale + bn1_shift,
        pad_row(head["b2"] * bn2_scale + bn2_shift, 128),
        pad_row(head["b3"], 128),
    ], axis=0)                                             # [3, 128]
    return params


# ------------------------------------- main -------------------------------------
if __name__ == "__main__":
    key = jax.random.PRNGKey(0)
    k_params, k_ids, k_num = jax.random.split(key, 3)

    params = init_params(k_params)
    input_ids = jax.random.randint(k_ids, (B, S), 2, VOCAB, dtype=jnp.int32)
    attention_mask = jnp.ones((B, S), jnp.int32)
    numerical_features = jax.random.normal(k_num, (B, NUM_NUM_FEATS), jnp.float32)
    labels = jnp.array([1, 0], jnp.int32)

    fwd = jax.jit(roberta_with_numerical_features)
    loss, logits = fwd(params, input_ids, attention_mask, numerical_features, labels)
    jax.block_until_ready((loss, logits))

    assert logits.shape == (B, NUM_LABELS)
    assert bool(jnp.isfinite(loss)) and bool(jnp.all(jnp.isfinite(logits)))
    print("KERNEL_OK")
</pallas_src>

<mosaic_0001>
module attributes {stable_mosaic.version = 11 : i64} {
  func.func @fused_forward_kernel(%arg0: memref<16x32xf32, #tpu.memory_space<vmem>>, %arg1: memref<16x64xf32, #tpu.memory_space<vmem>>, %arg2: memref<2x4xf32, #tpu.memory_space<vmem>>, %arg3: memref<2x1xi32, #tpu.memory_space<vmem>>, %arg4: memref<64x16xf32, #tpu.memory_space<vmem>>, %arg5: memref<64x32xf32, #tpu.memory_space<vmem>>, %arg6: memref<64x64xf32, #tpu.memory_space<vmem>>, %arg7: memref<2x16xf32, #tpu.memory_space<vmem>>, %arg8: memref<2x32x96xf32, #tpu.memory_space<vmem>>, %arg9: memref<2x32x32xf32, #tpu.memory_space<vmem>>, %arg10: memref<2x32x128xf32, #tpu.memory_space<vmem>>, %arg11: memref<2x128x32xf32, #tpu.memory_space<vmem>>, %arg12: memref<2x8x128xf32, #tpu.memory_space<vmem>>, %arg13: memref<36x128xf32, #tpu.memory_space<vmem>>, %arg14: memref<128x64xf32, #tpu.memory_space<vmem>>, %arg15: memref<64x128xf32, #tpu.memory_space<vmem>>, %arg16: memref<3x128xf32, #tpu.memory_space<vmem>>, %arg17: memref<8x128xf32, #tpu.memory_space<vmem>>) attributes {dimension_semantics = [], scalar_prefetch = 0 : i64, scratch_operands = 0 : i64, tpu.core_type = #tpu.core_type<tc>} {
    %c0 = arith.constant 0 : index
    %c0_0 = arith.constant 0 : index
    %0 = vector.load %arg0[%c0, %c0_0] : memref<16x32xf32, #tpu.memory_space<vmem>>, vector<16x32xf32>
    %c0_1 = arith.constant 0 : index
    %c0_2 = arith.constant 0 : index
    %1 = vector.load %arg1[%c0_1, %c0_2] : memref<16x64xf32, #tpu.memory_space<vmem>>, vector<16x64xf32>
    %c0_3 = arith.constant 0 : index
    %c0_4 = arith.constant 0 : index
    %2 = vector.load %arg4[%c0_3, %c0_4] : memref<64x16xf32, #tpu.memory_space<vmem>>, vector<64x16xf32>
    %c0_5 = arith.constant 0 : index
    %c0_6 = arith.constant 0 : index
    %3 = vector.load %arg5[%c0_5, %c0_6] : memref<64x32xf32, #tpu.memory_space<vmem>>, vector<64x32xf32>
    %c0_7 = arith.constant 0 : index
    %c0_8 = arith.constant 0 : index
    %4 = vector.load %arg6[%c0_7, %c0_8] : memref<64x64xf32, #tpu.memory_space<vmem>>, vector<64x64xf32>
    %c0_9 = arith.constant 0 : index
    %c0_10 = arith.constant 0 : index
    %c0_11 = arith.constant 0 : index
    %5 = vector.load %arg12[%c0_9, %c0_10, %c0_11] : memref<2x8x128xf32, #tpu.memory_space<vmem>>, vector<1x8x128xf32>
    %6 = vector.shape_cast %5 : vector<1x8x128xf32> to vector<8x128xf32>
    %c0_12 = arith.constant 0 : index
    %c0_13 = arith.constant 0 : index
    %c0_14 = arith.constant 0 : index
    %7 = vector.load %arg8[%c0_12, %c0_13, %c0_14] : memref<2x32x96xf32, #tpu.memory_space<vmem>>, vector<1x32x96xf32>
    %8 = vector.shape_cast %7 : vector<1x32x96xf32> to vector<32x96xf32>
    %cst = arith.constant dense<0.000000e+00> : vector<16x96xf32>
    %9 = tpu.matmul %0, %8, %cst {dimension_numbers = #tpu.dot_dimension_numbers<[1], [0], [0], [1], [0, 0, 1, 1], [], []>} : vector<16x32xf32>, vector<32x96xf32>, vector<16x96xf32> -> vector<16x96xf32>
    %10 = vector.extract_strided_slice %6 {offsets = [0, 0], sizes = [1, 96], strides = [1, 1]} : vector<8x128xf32> to vector<1x96xf32>
    %11 = vector.broadcast %10 : vector<1x96xf32> to vector<16x96xf32>
    %12 = arith.addf %9, %11 : vector<16x96xf32>
    %13 = vector.extract_strided_slice %12 {offsets = [0, 0], sizes = [16, 32], strides = [1, 1]} : vector<16x96xf32> to vector<16x32xf32>
    %14 = vector.extract_strided_slice %12 {offsets = [0, 32], sizes = [16, 32], strides = [1, 1]} : vector<16x96xf32> to vector<16x32xf32>
    %15 = vector.extract_strided_slice %12 {offsets = [0, 64], sizes = [16, 32], strides = [1, 1]} : vector<16x96xf32> to vector<16x32xf32>
    %cst_15 = arith.constant dense<0.000000e+00> : vector<64x32xf32>
    %16 = tpu.matmul %2, %14, %cst_15 {dimension_numbers = #tpu.dot_dimension_numbers<[1], [0], [0], [1], [0, 0, 1, 1], [], []>} : vector<64x16xf32>, vector<16x32xf32>, vector<64x32xf32> -> vector<64x32xf32>
    %17 = arith.mulf %16, %3 : vector<64x32xf32>
    %cst_16 = arith.constant dense<0.000000e+00> : vector<64x32xf32>
    %18 = tpu.matmul %2, %15, %cst_16 {dimension_numbers = #tpu.dot_dimension_numbers<[1], [0], [0], [1], [0, 0, 1, 1], [], []>} : vector<64x16xf32>, vector<16x32xf32>, vector<64x32xf32> -> vector<64x32xf32>
    %19 = arith.mulf %18, %3 : vector<64x32xf32>
    %cst_17 = arith.constant dense<0.000000e+00> : vector<16x64xf32>
    %20 = tpu.matmul %13, %17, %cst_17 {dimension_numbers = #tpu.dot_dimension_numbers<[1], [1], [0], [0], [0, 0, 1, 0], [], []>} : vector<16x32xf32>, vector<64x32xf32>, vector<16x64xf32> -> vector<16x64xf32>
    %21 = arith.addf %20, %1 : vector<16x64xf32>
    %cst_18 = arith.constant dense<0xFF800000> : vector<16xf32>
    %22 = vector.multi_reduction <maximumf>, %21, %cst_18 [1] : vector<16x64xf32> to vector<16xf32>
    %23 = vector.shape_cast %22 : vector<16xf32> to vector<16x1xf32>
    %24 = vector.broadcast %23 : vector<16x1xf32> to vector<16x64xf32>
    %25 = arith.subf %21, %24 : vector<16x64xf32>
    %26 = math.exp %25 : vector<16x64xf32>
    %cst_19 = arith.constant dense<0.000000e+00> : vector<16x64xf32>
    %27 = tpu.matmul %26, %4, %cst_19 {dimension_numbers = #tpu.dot_dimension_numbers<[1], [0], [0], [1], [0, 0, 1, 1], [], []>} : vector<16x64xf32>, vector<64x64xf32>, vector<16x64xf32> -> vector<16x64xf32>
    %28 = tpu.reciprocal %27 {approx = true} : vector<16x64xf32> -> vector<16x64xf32>
    %29 = arith.mulf %26, %28 : vector<16x64xf32>
    %cst_20 = arith.constant dense<0.000000e+00> : vector<16x32xf32>
    %30 = tpu.matmul %29, %19, %cst_20 {dimension_numbers = #tpu.dot_dimension_numbers<[1], [0], [0], [1], [0, 0, 1, 1], [], []>} : vector<16x64xf32>, vector<64x32xf32>, vector<16x32xf32> -> vector<16x32xf32>
    %c0_21 = arith.constant 0 : index
    %c0_22 = arith.constant 0 : index
    %c0_23 = arith.constant 0 : index
    %31 = vector.load %arg9[%c0_21, %c0_22, %c0_23] : memref<2x32x32xf32, #tpu.memory_space<vmem>>, vector<1x32x32xf32>
    %32 = vector.shape_cast %31 : vector<1x32x32xf32> to vector<32x32xf32>
    %cst_24 = arith.constant dense<0.000000e+00> : vector<16x32xf32>
    %33 = tpu.matmul %30, %32, %cst_24 {dimension_numbers = #tpu.dot_dimension_numbers<[1], [0], [0], [1], [0, 0, 1, 1], [], []>} : vector<16x32xf32>, vector<32x32xf32>, vector<16x32xf32> -> vector<16x32xf32>
    %34 = vector.extract_strided_slice %6 {offsets = [2, 0], sizes = [1, 32], strides = [1, 1]} : vector<8x128xf32> to vector<1x32xf32>
    %35 = vector.broadcast %34 : vector<1x32xf32> to vector<16x32xf32>
    %36 = arith.addf %33, %35 : vector<16x32xf32>
    %37 = arith.addf %0, %36 : vector<16x32xf32>
    %38 = vector.extract_strided_slice %6 {offsets = [3, 0], sizes = [1, 32], strides = [1, 1]} : vector<8x128xf32> to vector<1x32xf32>
    %39 = vector.extract_strided_slice %6 {offsets = [4, 0], sizes = [1, 32], strides = [1, 1]} : vector<8x128xf32> to vector<1x32xf32>
    %cst_25 = arith.constant dense<0.000000e+00> : vector<16xf32>
    %40 = vector.multi_reduction <add>, %37, %cst_25 [1] : vector<16x32xf32> to vector<16xf32>
    %41 = vector.shape_cast %40 : vector<16xf32> to vector<16x1xf32>
    %cst_26 = arith.constant 3.200000e+01 : f32
    %42 = vector.broadcast %cst_26 : f32 to vector<16x1xf32>
    %43 = arith.divf %41, %42 : vector<16x1xf32>
    %44 = vector.broadcast %43 : vector<16x1xf32> to vector<16x32xf32>
    %45 = arith.subf %37, %44 : vector<16x32xf32>
    %46 = vector.broadcast %43 : vector<16x1xf32> to vector<16x32xf32>
    %47 = arith.subf %37, %46 : vector<16x32xf32>
    %48 = arith.mulf %45, %47 : vector<16x32xf32>
    %cst_27 = arith.constant dense<0.000000e+00> : vector<16xf32>
    %49 = vector.multi_reduction <add>, %48, %cst_27 [1] : vector<16x32xf32> to vector<16xf32>
    %50 = vector.shape_cast %49 : vector<16xf32> to vector<16x1xf32>
    %cst_28 = arith.constant 3.200000e+01 : f32
    %51 = vector.broadcast %cst_28 : f32 to vector<16x1xf32>
    %52 = arith.divf %50, %51 : vector<16x1xf32>
    %53 = vector.broadcast %43 : vector<16x1xf32> to vector<16x32xf32>
    %54 = arith.subf %37, %53 : vector<16x32xf32>
    %cst_29 = arith.constant 9.99999974E-6 : f32
    %55 = vector.broadcast %cst_29 : f32 to vector<16x1xf32>
    %56 = arith.addf %52, %55 : vector<16x1xf32>
    %57 = math.rsqrt %56 : vector<16x1xf32>
    %58 = vector.broadcast %57 : vector<16x1xf32> to vector<16x32xf32>
    %59 = arith.mulf %54, %58 : vector<16x32xf32>
    %60 = vector.broadcast %38 : vector<1x32xf32> to vector<16x32xf32>
    %61 = arith.mulf %59, %60 : vector<16x32xf32>
    %62 = vector.broadcast %39 : vector<1x32xf32> to vector<16x32xf32>
    %63 = arith.addf %61, %62 : vector<16x32xf32>
    %c0_30 = arith.constant 0 : index
    %c0_31 = arith.constant 0 : index
    %c0_32 = arith.constant 0 : index
    %64 = vector.load %arg10[%c0_30, %c0_31, %c0_32] : memref<2x32x128xf32, #tpu.memory_space<vmem>>, vector<1x32x128xf32>
    %65 = vector.shape_cast %64 : vector<1x32x128xf32> to vector<32x128xf32>
    %cst_33 = arith.constant dense<0.000000e+00> : vector<16x128xf32>
    %66 = tpu.matmul %63, %65, %cst_33 {dimension_numbers = #tpu.dot_dimension_numbers<[1], [0], [0], [1], [0, 0, 1, 1], [], []>} : vector<16x32xf32>, vector<32x128xf32>, vector<16x128xf32> -> vector<16x128xf32>
    %67 = vector.extract_strided_slice %6 {offsets = [1, 0], sizes = [1, 128], strides = [1, 1]} : vector<8x128xf32> to vector<1x128xf32>
    %68 = vector.broadcast %67 : vector<1x128xf32> to vector<16x128xf32>
    %69 = arith.addf %66, %68 : vector<16x128xf32>
    %cst_34 = arith.constant 5.000000e-01 : f32
    %70 = vector.broadcast %cst_34 : f32 to vector<16x128xf32>
    %71 = arith.mulf %70, %69 : vector<16x128xf32>
    %cst_35 = arith.constant 4.471500e-02 : f32
    %72 = vector.broadcast %cst_35 : f32 to vector<16x128xf32>
    %73 = arith.mulf %72, %69 : vector<16x128xf32>
    %74 = arith.mulf %73, %69 : vector<16x128xf32>
    %75 = arith.mulf %74, %69 : vector<16x128xf32>
    %76 = arith.addf %69, %75 : vector<16x128xf32>
    %cst_36 = arith.constant 0.797884583 : f32
    %77 = vector.broadcast %cst_36 : f32 to vector<16x128xf32>
    %78 = arith.mulf %77, %76 : vector<16x128xf32>
    %79 = math.tanh %78 : vector<16x128xf32>
    %cst_37 = arith.constant 1.000000e+00 : f32
    %80 = vector.broadcast %cst_37 : f32 to vector<16x128xf32>
    %81 = arith.addf %80, %79 : vector<16x128xf32>
    %82 = arith.mulf %71, %81 : vector<16x128xf32>
    %c0_38 = arith.constant 0 : index
    %c0_39 = arith.constant 0 : index
    %c0_40 = arith.constant 0 : index
    %83 = vector.load %arg11[%c0_38, %c0_39, %c0_40] : memref<2x128x32xf32, #tpu.memory_space<vmem>>, vector<1x128x32xf32>
    %84 = vector.shape_cast %83 : vector<1x128x32xf32> to vector<128x32xf32>
    %cst_41 = arith.constant dense<0.000000e+00> : vector<16x32xf32>
    %85 = tpu.matmul %82, %84, %cst_41 {dimension_numbers = #tpu.dot_dimension_numbers<[1], [0], [0], [1], [0, 0, 1, 1], [], []>} : vector<16x128xf32>, vector<128x32xf32>, vector<16x32xf32> -> vector<16x32xf32>
    %86 = vector.extract_strided_slice %6 {offsets = [5, 0], sizes = [1, 32], strides = [1, 1]} : vector<8x128xf32> to vector<1x32xf32>
    %87 = vector.broadcast %86 : vector<1x32xf32> to vector<16x32xf32>
    %88 = arith.addf %85, %87 : vector<16x32xf32>
    %89 = arith.addf %63, %88 : vector<16x32xf32>
    %90 = vector.extract_strided_slice %6 {offsets = [6, 0], sizes = [1, 32], strides = [1, 1]} : vector<8x128xf32> to vector<1x32xf32>
    %91 = vector.extract_strided_slice %6 {offsets = [7, 0], sizes = [1, 32], strides = [1, 1]} : vector<8x128xf32> to vector<1x32xf32>
    %cst_42 = arith.constant dense<0.000000e+00> : vector<16xf32>
    %92 = vector.multi_reduction <add>, %89, %cst_42 [1] : vector<16x32xf32> to vector<16xf32>
    %93 = vector.shape_cast %92 : vector<16xf32> to vector<16x1xf32>
    %cst_43 = arith.constant 3.200000e+01 : f32
    %94 = vector.broadcast %cst_43 : f32 to vector<16x1xf32>
    %95 = arith.divf %93, %94 : vector<16x1xf32>
    %96 = vector.broadcast %95 : vector<16x1xf32> to vector<16x32xf32>
    %97 = arith.subf %89, %96 : vector<16x32xf32>
    %98 = vector.broadcast %95 : vector<16x1xf32> to vector<16x32xf32>
    %99 = arith.subf %89, %98 : vector<16x32xf32>
    %100 = arith.mulf %97, %99 : vector<16x32xf32>
    %cst_44 = arith.constant dense<0.000000e+00> : vector<16xf32>
    %101 = vector.multi_reduction <add>, %100, %cst_44 [1] : vector<16x32xf32> to vector<16xf32>
    %102 = vector.shape_cast %101 : vector<16xf32> to vector<16x1xf32>
    %cst_45 = arith.constant 3.200000e+01 : f32
    %103 = vector.broadcast %cst_45 : f32 to vector<16x1xf32>
    %104 = arith.divf %102, %103 : vector<16x1xf32>
    %105 = vector.broadcast %95 : vector<16x1xf32> to vector<16x32xf32>
    %106 = arith.subf %89, %105 : vector<16x32xf32>
    %cst_46 = arith.constant 9.99999974E-6 : f32
    %107 = vector.broadcast %cst_46 : f32 to vector<16x1xf32>
    %108 = arith.addf %104, %107 : vector<16x1xf32>
    %109 = math.rsqrt %108 : vector<16x1xf32>
    %110 = vector.broadcast %109 : vector<16x1xf32> to vector<16x32xf32>
    %111 = arith.mulf %106, %110 : vector<16x32xf32>
    %112 = vector.broadcast %90 : vector<1x32xf32> to vector<16x32xf32>
    %113 = arith.mulf %111, %112 : vector<16x32xf32>
    %114 = vector.broadcast %91 : vector<1x32xf32> to vector<16x32xf32>
    %115 = arith.addf %113, %114 : vector<16x32xf32>
    %c1 = arith.constant 1 : index
    %c0_47 = arith.constant 0 : index
    %c0_48 = arith.constant 0 : index
    %116 = vector.load %arg12[%c1, %c0_47, %c0_48] : memref<2x8x128xf32, #tpu.memory_space<vmem>>, vector<1x8x128xf32>
    %117 = vector.shape_cast %116 : vector<1x8x128xf32> to vector<8x128xf32>
    %c1_49 = arith.constant 1 : index
    %c0_50 = arith.constant 0 : index
    %c0_51 = arith.constant 0 : index
    %118 = vector.load %arg8[%c1_49, %c0_50, %c0_51] : memref<2x32x96xf32, #tpu.memory_space<vmem>>, vector<1x32x96xf32>
    %119 = vector.shape_cast %118 : vector<1x32x96xf32> to vector<32x96xf32>
    %cst_52 = arith.constant dense<0.000000e+00> : vector<16x96xf32>
    %120 = tpu.matmul %115, %119, %cst_52 {dimension_numbers = #tpu.dot_dimension_numbers<[1], [0], [0], [1], [0, 0, 1, 1], [], []>} : vector<16x32xf32>, vector<32x96xf32>, vector<16x96xf32> -> vector<16x96xf32>
    %121 = vector.extract_strided_slice %117 {offsets = [0, 0], sizes = [1, 96], strides = [1, 1]} : vector<8x128xf32> to vector<1x96xf32>
    %122 = vector.broadcast %121 : vector<1x96xf32> to vector<16x96xf32>
    %123 = arith.addf %120, %122 : vector<16x96xf32>
    %124 = vector.extract_strided_slice %123 {offsets = [0, 0], sizes = [16, 32], strides = [1, 1]} : vector<16x96xf32> to vector<16x32xf32>
    %125 = vector.extract_strided_slice %123 {offsets = [0, 32], sizes = [16, 32], strides = [1, 1]} : vector<16x96xf32> to vector<16x32xf32>
    %126 = vector.extract_strided_slice %123 {offsets = [0, 64], sizes = [16, 32], strides = [1, 1]} : vector<16x96xf32> to vector<16x32xf32>
    %cst_53 = arith.constant dense<0.000000e+00> : vector<64x32xf32>
    %127 = tpu.matmul %2, %125, %cst_53 {dimension_numbers = #tpu.dot_dimension_numbers<[1], [0], [0], [1], [0, 0, 1, 1], [], []>} : vector<64x16xf32>, vector<16x32xf32>, vector<64x32xf32> -> vector<64x32xf32>
    %128 = arith.mulf %127, %3 : vector<64x32xf32>
    %cst_54 = arith.constant dense<0.000000e+00> : vector<64x32xf32>
    %129 = tpu.matmul %2, %126, %cst_54 {dimension_numbers = #tpu.dot_dimension_numbers<[1], [0], [0], [1], [0, 0, 1, 1], [], []>} : vector<64x16xf32>, vector<16x32xf32>, vector<64x32xf32> -> vector<64x32xf32>
    %130 = arith.mulf %129, %3 : vector<64x32xf32>
    %cst_55 = arith.constant dense<0.000000e+00> : vector<16x64xf32>
    %131 = tpu.matmul %124, %128, %cst_55 {dimension_numbers = #tpu.dot_dimension_numbers<[1], [1], [0], [0], [0, 0, 1, 0], [], []>} : vector<16x32xf32>, vector<64x32xf32>, vector<16x64xf32> -> vector<16x64xf32>
    %132 = arith.addf %131, %1 : vector<16x64xf32>
    %cst_56 = arith.constant dense<0xFF800000> : vector<16xf32>
    %133 = vector.multi_reduction <maximumf>, %132, %cst_56 [1] : vector<16x64xf32> to vector<16xf32>
    %134 = vector.shape_cast %133 : vector<16xf32> to vector<16x1xf32>
    %135 = vector.broadcast %134 : vector<16x1xf32> to vector<16x64xf32>
    %136 = arith.subf %132, %135 : vector<16x64xf32>
    %137 = math.exp %136 : vector<16x64xf32>
    %cst_57 = arith.constant dense<0.000000e+00> : vector<16x64xf32>
    %138 = tpu.matmul %137, %4, %cst_57 {dimension_numbers = #tpu.dot_dimension_numbers<[1], [0], [0], [1], [0, 0, 1, 1], [], []>} : vector<16x64xf32>, vector<64x64xf32>, vector<16x64xf32> -> vector<16x64xf32>
    %139 = tpu.reciprocal %138 {approx = true} : vector<16x64xf32> -> vector<16x64xf32>
    %140 = arith.mulf %137, %139 : vector<16x64xf32>
    %cst_58 = arith.constant dense<0.000000e+00> : vector<16x32xf32>
    %141 = tpu.matmul %140, %130, %cst_58 {dimension_numbers = #tpu.dot_dimension_numbers<[1], [0], [0], [1], [0, 0, 1, 1], [], []>} : vector<16x64xf32>, vector<64x32xf32>, vector<16x32xf32> -> vector<16x32xf32>
    %c1_59 = arith.constant 1 : index
    %c0_60 = arith.constant 0 : index
    %c0_61 = arith.constant 0 : index
    %142 = vector.load %arg9[%c1_59, %c0_60, %c0_61] : memref<2x32x32xf32, #tpu.memory_space<vmem>>, vector<1x32x32xf32>
    %143 = vector.shape_cast %142 : vector<1x32x32xf32> to vector<32x32xf32>
    %cst_62 = arith.constant dense<0.000000e+00> : vector<16x32xf32>
    %144 = tpu.matmul %141, %143, %cst_62 {dimension_numbers = #tpu.dot_dimension_numbers<[1], [0], [0], [1], [0, 0, 1, 1], [], []>} : vector<16x32xf32>, vector<32x32xf32>, vector<16x32xf32> -> vector<16x32xf32>
    %145 = vector.extract_strided_slice %117 {offsets = [2, 0], sizes = [1, 32], strides = [1, 1]} : vector<8x128xf32> to vector<1x32xf32>
    %146 = vector.broadcast %145 : vector<1x32xf32> to vector<16x32xf32>
    %147 = arith.addf %144, %146 : vector<16x32xf32>
    %148 = arith.addf %115, %147 : vector<16x32xf32>
    %149 = vector.extract_strided_slice %117 {offsets = [3, 0], sizes = [1, 32], strides = [1, 1]} : vector<8x128xf32> to vector<1x32xf32>
    %150 = vector.extract_strided_slice %117 {offsets = [4, 0], sizes = [1, 32], strides = [1, 1]} : vector<8x128xf32> to vector<1x32xf32>
    %cst_63 = arith.constant dense<0.000000e+00> : vector<16xf32>
    %151 = vector.multi_reduction <add>, %148, %cst_63 [1] : vector<16x32xf32> to vector<16xf32>
    %152 = vector.shape_cast %151 : vector<16xf32> to vector<16x1xf32>
    %cst_64 = arith.constant 3.200000e+01 : f32
    %153 = vector.broadcast %cst_64 : f32 to vector<16x1xf32>
    %154 = arith.divf %152, %153 : vector<16x1xf32>
    %155 = vector.broadcast %154 : vector<16x1xf32> to vector<16x32xf32>
    %156 = arith.subf %148, %155 : vector<16x32xf32>
    %157 = vector.broadcast %154 : vector<16x1xf32> to vector<16x32xf32>
    %158 = arith.subf %148, %157 : vector<16x32xf32>
    %159 = arith.mulf %156, %158 : vector<16x32xf32>
    %cst_65 = arith.constant dense<0.000000e+00> : vector<16xf32>
    %160 = vector.multi_reduction <add>, %159, %cst_65 [1] : vector<16x32xf32> to vector<16xf32>
    %161 = vector.shape_cast %160 : vector<16xf32> to vector<16x1xf32>
    %cst_66 = arith.constant 3.200000e+01 : f32
    %162 = vector.broadcast %cst_66 : f32 to vector<16x1xf32>
    %163 = arith.divf %161, %162 : vector<16x1xf32>
    %164 = vector.broadcast %154 : vector<16x1xf32> to vector<16x32xf32>
    %165 = arith.subf %148, %164 : vector<16x32xf32>
    %cst_67 = arith.constant 9.99999974E-6 : f32
    %166 = vector.broadcast %cst_67 : f32 to vector<16x1xf32>
    %167 = arith.addf %163, %166 : vector<16x1xf32>
    %168 = math.rsqrt %167 : vector<16x1xf32>
    %169 = vector.broadcast %168 : vector<16x1xf32> to vector<16x32xf32>
    %170 = arith.mulf %165, %169 : vector<16x32xf32>
    %171 = vector.broadcast %149 : vector<1x32xf32> to vector<16x32xf32>
    %172 = arith.mulf %170, %171 : vector<16x32xf32>
    %173 = vector.broadcast %150 : vector<1x32xf32> to vector<16x32xf32>
    %174 = arith.addf %172, %173 : vector<16x32xf32>
    %c1_68 = arith.constant 1 : index
    %c0_69 = arith.constant 0 : index
    %c0_70 = arith.constant 0 : index
    %175 = vector.load %arg10[%c1_68, %c0_69, %c0_70] : memref<2x32x128xf32, #tpu.memory_space<vmem>>, vector<1x32x128xf32>
    %176 = vector.shape_cast %175 : vector<1x32x128xf32> to vector<32x128xf32>
    %cst_71 = arith.constant dense<0.000000e+00> : vector<16x128xf32>
    %177 = tpu.matmul %174, %176, %cst_71 {dimension_numbers = #tpu.dot_dimension_numbers<[1], [0], [0], [1], [0, 0, 1, 1], [], []>} : vector<16x32xf32>, vector<32x128xf32>, vector<16x128xf32> -> vector<16x128xf32>
    %178 = vector.extract_strided_slice %117 {offsets = [1, 0], sizes = [1, 128], strides = [1, 1]} : vector<8x128xf32> to vector<1x128xf32>
    %179 = vector.broadcast %178 : vector<1x128xf32> to vector<16x128xf32>
    %180 = arith.addf %177, %179 : vector<16x128xf32>
    %cst_72 = arith.constant 5.000000e-01 : f32
    %181 = vector.broadcast %cst_72 : f32 to vector<16x128xf32>
    %182 = arith.mulf %181, %180 : vector<16x128xf32>
    %cst_73 = arith.constant 4.471500e-02 : f32
    %183 = vector.broadcast %cst_73 : f32 to vector<16x128xf32>
    %184 = arith.mulf %183, %180 : vector<16x128xf32>
    %185 = arith.mulf %184, %180 : vector<16x128xf32>
    %186 = arith.mulf %185, %180 : vector<16x128xf32>
    %187 = arith.addf %180, %186 : vector<16x128xf32>
    %cst_74 = arith.constant 0.797884583 : f32
    %188 = vector.broadcast %cst_74 : f32 to vector<16x128xf32>
    %189 = arith.mulf %188, %187 : vector<16x128xf32>
    %190 = math.tanh %189 : vector<16x128xf32>
    %cst_75 = arith.constant 1.000000e+00 : f32
    %191 = vector.broadcast %cst_75 : f32 to vector<16x128xf32>
    %192 = arith.addf %191, %190 : vector<16x128xf32>
    %193 = arith.mulf %182, %192 : vector<16x128xf32>
    %c1_76 = arith.constant 1 : index
    %c0_77 = arith.constant 0 : index
    %c0_78 = arith.constant 0 : index
    %194 = vector.load %arg11[%c1_76, %c0_77, %c0_78] : memref<2x128x32xf32, #tpu.memory_space<vmem>>, vector<1x128x32xf32>
    %195 = vector.shape_cast %194 : vector<1x128x32xf32> to vector<128x32xf32>
    %cst_79 = arith.constant dense<0.000000e+00> : vector<16x32xf32>
    %196 = tpu.matmul %193, %195, %cst_79 {dimension_numbers = #tpu.dot_dimension_numbers<[1], [0], [0], [1], [0, 0, 1, 1], [], []>} : vector<16x128xf32>, vector<128x32xf32>, vector<16x32xf32> -> vector<16x32xf32>
    %197 = vector.extract_strided_slice %117 {offsets = [5, 0], sizes = [1, 32], strides = [1, 1]} : vector<8x128xf32> to vector<1x32xf32>
    %198 = vector.broadcast %197 : vector<1x32xf32> to vector<16x32xf32>
    %199 = arith.addf %196, %198 : vector<16x32xf32>
    %200 = arith.addf %174, %199 : vector<16x32xf32>
    %201 = vector.extract_strided_slice %117 {offsets = [6, 0], sizes = [1, 32], strides = [1, 1]} : vector<8x128xf32> to vector<1x32xf32>
    %202 = vector.extract_strided_slice %117 {offsets = [7, 0], sizes = [1, 32], strides = [1, 1]} : vector<8x128xf32> to vector<1x32xf32>
    %cst_80 = arith.constant dense<0.000000e+00> : vector<16xf32>
    %203 = vector.multi_reduction <add>, %200, %cst_80 [1] : vector<16x32xf32> to vector<16xf32>
    %204 = vector.shape_cast %203 : vector<16xf32> to vector<16x1xf32>
    %cst_81 = arith.constant 3.200000e+01 : f32
    %205 = vector.broadcast %cst_81 : f32 to vector<16x1xf32>
    %206 = arith.divf %204, %205 : vector<16x1xf32>
    %207 = vector.broadcast %206 : vector<16x1xf32> to vector<16x32xf32>
    %208 = arith.subf %200, %207 : vector<16x32xf32>
    %209 = vector.broadcast %206 : vector<16x1xf32> to vector<16x32xf32>
    %210 = arith.subf %200, %209 : vector<16x32xf32>
    %211 = arith.mulf %208, %210 : vector<16x32xf32>
    %cst_82 = arith.constant dense<0.000000e+00> : vector<16xf32>
    %212 = vector.multi_reduction <add>, %211, %cst_82 [1] : vector<16x32xf32> to vector<16xf32>
    %213 = vector.shape_cast %212 : vector<16xf32> to vector<16x1xf32>
    %cst_83 = arith.constant 3.200000e+01 : f32
    %214 = vector.broadcast %cst_83 : f32 to vector<16x1xf32>
    %215 = arith.divf %213, %214 : vector<16x1xf32>
    %216 = vector.broadcast %206 : vector<16x1xf32> to vector<16x32xf32>
    %217 = arith.subf %200, %216 : vector<16x32xf32>
    %cst_84 = arith.constant 9.99999974E-6 : f32
    %218 = vector.broadcast %cst_84 : f32 to vector<16x1xf32>
    %219 = arith.addf %215, %218 : vector<16x1xf32>
    %220 = math.rsqrt %219 : vector<16x1xf32>
    %221 = vector.broadcast %220 : vector<16x1xf32> to vector<16x32xf32>
    %222 = arith.mulf %217, %221 : vector<16x32xf32>
    %223 = vector.broadcast %201 : vector<1x32xf32> to vector<16x32xf32>
    %224 = arith.mulf %222, %223 : vector<16x32xf32>
    %225 = vector.broadcast %202 : vector<1x32xf32> to vector<16x32xf32>
    %226 = arith.addf %224, %225 : vector<16x32xf32>
    %c0_85 = arith.constant 0 : index
    %c0_86 = arith.constant 0 : index
    %227 = vector.load %arg7[%c0_85, %c0_86] : memref<2x16xf32, #tpu.memory_space<vmem>>, vector<2x16xf32>
    %cst_87 = arith.constant dense<0.000000e+00> : vector<2x32xf32>
    %228 = tpu.matmul %227, %226, %cst_87 {dimension_numbers = #tpu.dot_dimension_numbers<[1], [0], [0], [1], [0, 0, 1, 1], [], []>} : vector<2x16xf32>, vector<16x32xf32>, vector<2x32xf32> -> vector<2x32xf32>
    %c0_88 = arith.constant 0 : index
    %c0_89 = arith.constant 0 : index
    %229 = vector.load %arg16[%c0_88, %c0_89] : memref<3x128xf32, #tpu.memory_space<vmem>>, vector<3x128xf32>
    %c0_90 = arith.constant 0 : index
    %c0_91 = arith.constant 0 : index
    %230 = vector.load %arg13[%c0_90, %c0_91] : memref<36x128xf32, #tpu.memory_space<vmem>>, vector<32x128xf32>
    %cst_92 = arith.constant dense<0.000000e+00> : vector<2x128xf32>
    %231 = tpu.matmul %228, %230, %cst_92 {dimension_numbers = #tpu.dot_dimension_numbers<[1], [0], [0], [1], [0, 0, 1, 1], [], []>} : vector<2x32xf32>, vector<32x128xf32>, vector<2x128xf32> -> vector<2x128xf32>
    %c0_93 = arith.constant 0 : index
    %c0_94 = arith.constant 0 : index
    %232 = vector.load %arg2[%c0_93, %c0_94] : memref<2x4xf32, #tpu.memory_space<vmem>>, vector<2x4xf32>
    %c32 = arith.constant 32 : index
    %c0_95 = arith.constant 0 : index
    %233 = vector.load %arg13[%c32, %c0_95] : memref<36x128xf32, #tpu.memory_space<vmem>>, vector<4x128xf32>
    %cst_96 = arith.constant dense<0.000000e+00> : vector<2x128xf32>
    %234 = tpu.matmul %232, %233, %cst_96 {dimension_numbers = #tpu.dot_dimension_numbers<[1], [0], [0], [1], [0, 0, 1, 1], [], []>} : vector<2x4xf32>, vector<4x128xf32>, vector<2x128xf32> -> vector<2x128xf32>
    %235 = arith.addf %231, %234 : vector<2x128xf32>
    %236 = vector.extract_strided_slice %229 {offsets = [0, 0], sizes = [1, 128], strides = [1, 1]} : vector<3x128xf32> to vector<1x128xf32>
    %237 = vector.broadcast %236 : vector<1x128xf32> to vector<2x128xf32>
    %238 = arith.addf %235, %237 : vector<2x128xf32>
    %cst_97 = arith.constant 0.000000e+00 : f32
    %239 = vector.broadcast %cst_97 : f32 to vector<2x128xf32>
    %240 = arith.cmpf ogt, %238, %239 : vector<2x128xf32>
    %cst_98 = arith.constant 1.000000e-01 : f32
    %241 = vector.broadcast %cst_98 : f32 to vector<2x128xf32>
    %242 = arith.mulf %241, %238 : vector<2x128xf32>
    %243 = arith.select %240, %238, %242 : vector<2x128xi1>, vector<2x128xf32>
    %c0_99 = arith.constant 0 : index
    %c0_100 = arith.constant 0 : index
    %244 = vector.load %arg14[%c0_99, %c0_100] : memref<128x64xf32, #tpu.memory_space<vmem>>, vector<128x64xf32>
    %cst_101 = arith.constant dense<0.000000e+00> : vector<2x64xf32>
    %245 = tpu.matmul %243, %244, %cst_101 {dimension_numbers = #tpu.dot_dimension_numbers<[1], [0], [0], [1], [0, 0, 1, 1], [], []>} : vector<2x128xf32>, vector<128x64xf32>, vector<2x64xf32> -> vector<2x64xf32>
    %246 = vector.extract_strided_slice %229 {offsets = [1, 0], sizes = [1, 64], strides = [1, 1]} : vector<3x128xf32> to vector<1x64xf32>
    %247 = vector.broadcast %246 : vector<1x64xf32> to vector<2x64xf32>
    %248 = arith.addf %245, %247 : vector<2x64xf32>
    %cst_102 = arith.constant 0.000000e+00 : f32
    %249 = vector.broadcast %cst_102 : f32 to vector<2x64xf32>
    %250 = arith.maximumf %248, %249 : vector<2x64xf32>
    %c0_103 = arith.constant 0 : index
    %c0_104 = arith.constant 0 : index
    %251 = vector.load %arg15[%c0_103, %c0_104] : memref<64x128xf32, #tpu.memory_space<vmem>>, vector<64x128xf32>
    %cst_105 = arith.constant dense<0.000000e+00> : vector<2x128xf32>
    %252 = tpu.matmul %250, %251, %cst_105 {dimension_numbers = #tpu.dot_dimension_numbers<[1], [0], [0], [1], [0, 0, 1, 1], [], []>} : vector<2x64xf32>, vector<64x128xf32>, vector<2x128xf32> -> vector<2x128xf32>
    %253 = vector.extract_strided_slice %229 {offsets = [2, 0], sizes = [1, 128], strides = [1, 1]} : vector<3x128xf32> to vector<1x128xf32>
    %254 = vector.broadcast %253 : vector<1x128xf32> to vector<2x128xf32>
    %255 = arith.addf %252, %254 : vector<2x128xf32>
    %256 = vector.extract_strided_slice %255 {offsets = [0, 0], sizes = [2, 2], strides = [1, 1]} : vector<2x128xf32> to vector<2x2xf32>
    %c0_106 = arith.constant 0 : index
    %c0_107 = arith.constant 0 : index
    %257 = vector.load %arg3[%c0_106, %c0_107] : memref<2x1xi32, #tpu.memory_space<vmem>>, vector<2x1xi32>
    %cst_108 = arith.constant dense<0xFF800000> : vector<2xf32>
    %258 = vector.multi_reduction <maximumf>, %256, %cst_108 [1] : vector<2x2xf32> to vector<2xf32>
    %259 = vector.shape_cast %258 : vector<2xf32> to vector<2x1xf32>
    %260 = vector.broadcast %259 : vector<2x1xf32> to vector<2x2xf32>
    %261 = arith.subf %256, %260 : vector<2x2xf32>
    %262 = math.exp %261 : vector<2x2xf32>
    %cst_109 = arith.constant dense<0.000000e+00> : vector<2xf32>
    %263 = vector.multi_reduction <add>, %262, %cst_109 [1] : vector<2x2xf32> to vector<2xf32>
    %264 = vector.shape_cast %263 : vector<2xf32> to vector<2x1xf32>
    %265 = vector.broadcast %264 : vector<2x1xf32> to vector<2x2xf32>
    %266 = arith.divf %262, %265 : vector<2x2xf32>
    %267 = tpu.iota {dimensions = array<i32: 1>} : vector<2x2xi32>
    %268 = vector.broadcast %257 : vector<2x1xi32> to vector<2x2xi32>
    %269 = arith.cmpi eq, %267, %268 : vector<2x2xi32>
    %270 = arith.extui %269 : vector<2x2xi1> to vector<2x2xi32>
    %271 = arith.sitofp %270 : vector<2x2xi32> to vector<2x2xf32>
    %272 = arith.mulf %266, %271 : vector<2x2xf32>
    %cst_110 = arith.constant dense<0.000000e+00> : vector<2xf32>
    %273 = vector.multi_reduction <add>, %272, %cst_110 [1] : vector<2x2xf32> to vector<2xf32>
    %274 = vector.shape_cast %273 : vector<2xf32> to vector<2x1xf32>
    %c1_i32 = arith.constant 1 : i32
    %275 = vector.broadcast %c1_i32 : i32 to vector<2x1xi32>
    %276 = arith.cmpi eq, %257, %275 : vector<2x1xi32>
    %cst_111 = arith.constant 7.500000e-01 : f32
    %cst_112 = arith.constant 2.500000e-01 : f32
    %277 = vector.broadcast %cst_111 : f32 to vector<2x1xf32>
    %278 = vector.broadcast %cst_112 : f32 to vector<2x1xf32>
    %279 = arith.select %276, %277, %278 : vector<2x1xi1>, vector<2x1xf32>
    %cst_113 = arith.constant 1.000000e+00 : f32
    %280 = vector.broadcast %cst_113 : f32 to vector<2x1xf32>
    %281 = arith.subf %280, %274 : vector<2x1xf32>
    %cst_114 = arith.constant 0.000000e+00 : f32
    %282 = vector.broadcast %cst_114 : f32 to vector<2x1xf32>
    %283 = arith.subf %282, %279 : vector<2x1xf32>
    %284 = arith.mulf %281, %281 : vector<2x1xf32>
    %285 = arith.mulf %283, %284 : vector<2x1xf32>
    %cst_115 = arith.constant 9.99999993E-9 : f32
    %286 = vector.broadcast %cst_115 : f32 to vector<2x1xf32>
    %287 = arith.addf %274, %286 : vector<2x1xf32>
    %288 = math.log %287 : vector<2x1xf32>
    %289 = arith.mulf %285, %288 : vector<2x1xf32>
    %cst_116 = arith.constant dense<0.000000e+00> : vector<1xf32>
    %290 = vector.multi_reduction <add>, %289, %cst_116 [0] : vector<2x1xf32> to vector<1xf32>
    %291 = vector.shape_cast %290 : vector<1xf32> to vector<1x1xf32>
    %cst_117 = arith.constant 2.000000e+00 : f32
    %292 = vector.broadcast %cst_117 : f32 to vector<1x1xf32>
    %293 = arith.divf %291, %292 : vector<1x1xf32>
    %c0_118 = arith.constant 0 : index
    %c0_119 = arith.constant 0 : index
    %294 = vector.load %arg17[%c0_118, %c0_119] : memref<8x128xf32, #tpu.memory_space<vmem>>, vector<2x128xf32>
    tpu.vector_store %arg17[%c0_118, %c0_119], %255 {strides = array<i32>} : memref<8x128xf32, #tpu.memory_space<vmem>>, vector<2x128xf32>,
    %295 = vector.shape_cast %293 : vector<1x1xf32> to vector<1x1xf32>
    %296 = vector.broadcast %295 : vector<1x1xf32> to vector<6x128xf32>
    %c2 = arith.constant 2 : index
    %c0_120 = arith.constant 0 : index
    %297 = vector.load %arg17[%c2, %c0_120] : memref<8x128xf32, #tpu.memory_space<vmem>>, vector<6x128xf32>
    tpu.vector_store %arg17[%c2, %c0_120], %296 {strides = array<i32>} : memref<8x128xf32, #tpu.memory_space<vmem>>, vector<6x128xf32>,
    return
  }
}

</mosaic_0001>

<bundles_post_ra>
// kernel: tile.9
= control target key start
LH: loop header
LB: loop body
LE: loop exit
PB: predicated region body
PF: predicated region fallthrough
CT: control target
= control target key end

     0   :  { %vm83_vm0 = vcmask 1047556   ;;  %vm85_vm1 = vcmask 130048   ;;  %s196_s9 = smov 48   ;;  %s197_s14 = smov 16   ;;  %vm104_vm2 = vcmask 523648   ;;  %vm125_vm3 = vcmask 392448   ;;  %s290_s0 = inlined_call_operand.vmem [shape: f32[16,4,16], index: 0, kind: input, shape index: {}]   ;;  %s291_s1 = inlined_call_operand.vmem [shape: f32[16,64], index: 1, kind: output, shape index: {}]  }
   0x1   :  { %v181_v0 = vld [vmem:[%s290_s0 + $0x1c] sm:$0xf]  ;;  %v182_v1 = vld [vmem:[%s290_s0 + $0x18] sm:$0xf]  ;;  %v183_v2 = vld [vmem:[%s290_s0 + $0x14] sm:$0xf] }
   0x2   :  { %49 = vst [vmem:[#allocation0 + $0x38] sm:$0xf] %v181_v0  ;;  %54 = vst [vmem:[#allocation0 + $0x30] sm:$0xf] %v182_v1  ;;  %v184_v3 = vld [vmem:[%s290_s0 + $0x10] sm:$0xf] }
   0x3   :  { %59 = vst [vmem:[#allocation0 + $0x28] sm:$0xf] %v183_v2  ;;  %v185_v4 = vld [vmem:[%s290_s0 + $0xc] sm:$0xf]  ;;  %v186_v5 = vld [vmem:[%s290_s0 + $0x8] sm:$0xf] }
   0x4   :  { %64 = vst [vmem:[#allocation0 + $0x20] sm:$0xf] %v184_v3  ;;  %69 = vst [vmem:[#allocation0 + $0x18] sm:$0xf] %v185_v4  ;;  %v187_v6 = vld [vmem:[%s290_s0 + $0x4] sm:$0xf] }
   0x5   :  { %74 = vst [vmem:[#allocation0 + $0x10] sm:$0xf] %v186_v5  ;;  %v79_v7 = vld [vmem:[%s290_s0] sm:$0xf]  ;;  %78 = vst [vmem:[#allocation0 + $0x8] sm:$0xf] %v187_v6 }
   0x6   :  { %80 = vst [vmem:[#allocation0] sm:$0xf] %v79_v7  ;;  %v173_v8 = vld [vmem:[%s290_s0 + $0x3c] sm:$0xf]  ;;  %v174_v9 = vld [vmem:[%s290_s0 + $0x38] sm:$0xf] }
   0x7   :  { %9 = vst [vmem:[#allocation0 + $0x78] sm:$0xf] %v173_v8  ;;  %14 = vst [vmem:[#allocation0 + $0x70] sm:$0xf] %v174_v9  ;;  %v175_v10 = vld [vmem:[%s290_s0 + $0x34] sm:$0xf] }
   0x8   :  { %v176_v11 = vld [vmem:[%s290_s0 + $0x30] sm:$0xf]  ;;  %v177_v12 = vld [vmem:[%s290_s0 + $0x2c] sm:$0xf]  ;;  %19 = vst [vmem:[#allocation0 + $0x68] sm:$0xf] %v175_v10 }
   0x9   :  { %24 = vst [vmem:[#allocation0 + $0x60] sm:$0xf] %v176_v11  ;;  %29 = vst [vmem:[#allocation0 + $0x58] sm:$0xf] %v177_v12  ;;  %v178_v13 = vld [vmem:[%s290_s0 + $0x28] sm:$0xf] }
   0xa   :  { %v179_v14 = vld [vmem:[%s290_s0 + $0x24] sm:$0xf]  ;;  %v180_v15 = vld [vmem:[%s290_s0 + $0x20] sm:$0xf]  ;;  %34 = vst [vmem:[#allocation0 + $0x50] sm:$0xf] %v178_v13 }
   0xb   :  { %39 = vst [vmem:[#allocation0 + $0x48] sm:$0xf] %v179_v14  ;;  %44 = vst [vmem:[#allocation0 + $0x40] sm:$0xf] %v180_v15  ;;  %s195_s0 = smov 32   ;;  %vm146_vm4 = vcmask 261248  }
   0xc   :  { %v120_v16 = vld [vmem:[#allocation0 + $0x2] ss:$8 sm:$0xf0]   ;;  %v99_v17 = vld [vmem:[#allocation0 + $0x3] ss:$8 sm:$0xf0]  }
   0xd   :  { %v118_v18 = vld [vmem:[#allocation0 + $0x2] ss:$8 sm:$0xf]   ;;  %v97_v19 = vld [vmem:[#allocation0 + $0x3] ss:$8 sm:$0xf]  }
   0xe   :  { %v122_v20 = vsel %vm83_vm0, %v120_v16, %v118_v18  ;;  %v101_v21 = vsel %vm83_vm0, %v99_v17, %v97_v19  ;;  %v139_v24 = vld [vmem:[#allocation0 + $0x1] ss:$8 sm:$0xf]   ;;  %v81_v32 = vld [vmem:[#allocation0] ss:$8 sm:$0xf]  }
   0xf   :  { %123 = vrot.lane.b32.xlu1 %v122_v20, %s195_s0  ;;  %102 = vrot.lane.b32.xlu0 %v101_v21, %s196_s9  ;;  %v141_v25 = vld [vmem:[#allocation0 + $0x1] ss:$8 sm:$0xf0]   ;;  %v82_v33 = vld [vmem:[#allocation0] ss:$8 sm:$0xf0]  }
  0x10   :  { %v130_v22 = vld [vmem:[#allocation0 + $0x42] ss:$8 sm:$0xf0]   ;;  %v109_v23 = vld [vmem:[#allocation0 + $0x43] ss:$8 sm:$0xf0]   ;;  %v84_v34 = vsel %vm83_vm0, %v82_v33, %v81_v32  ;;  %v143_v38 = vsel %vm83_vm0, %v141_v25, %v139_v24 }
  0x11   :  { %v151_v31 = vld [vmem:[#allocation0 + $0x41] ss:$8 sm:$0xf0]   ;;  %v90_v36 = vld [vmem:[#allocation0 + $0x40] ss:$8 sm:$0xf0]  }
  0x12   :  { %v128_v26 = vld [vmem:[#allocation0 + $0x42] ss:$8 sm:$0xf]   ;;  %v107_v27 = vld [vmem:[#allocation0 + $0x43] ss:$8 sm:$0xf]  }
  0x13   :  { %v132_v28 = vsel %vm83_vm0, %v130_v22, %v128_v26  ;;  %v111_v29 = vsel %vm83_vm0, %v109_v23, %v107_v27  ;;  %v149_v30 = vld [vmem:[#allocation0 + $0x41] ss:$8 sm:$0xf]   ;;  %v88_v35 = vld [vmem:[#allocation0 + $0x40] ss:$8 sm:$0xf]  }
  0x14   :  { %133 = vrot.lane.b32.xlu1 %v132_v28, %s195_s0  ;;  %112 = vrot.lane.b32.xlu0 %v111_v29, %s196_s9  ;;  %v153_v37 = vsel %vm83_vm0, %v151_v31, %v149_v30  ;;  %86 = vst.msk [vmem:[%s291_s1] sm:$0xff] %vm85_vm1, %v84_v34   ;;  %v92_v39 = vsel %vm83_vm0, %v90_v36, %v88_v35 }
  0x15   :  { %188 = vst.msk [vmem:[%s291_s1 + $0x8] sm:$0xff] %vm85_vm1, %v92_v39  }
  0x18   :  { %154 = vrot.lane.b32.xlu1 %v153_v37, %s197_s14  ;;  %144 = vrot.lane.b32.xlu0 %v143_v38, %s197_s14 }
  0x81   :  { %v124_v40 = vpop.permute.xlu1 %123   ;;  %v103_v41 = vpop.permute.xlu0 %102  }
  0x82   :  { %105 = vst.msk [vmem:[%s291_s1] sm:$0xff] %vm104_vm2, %v103_v41  }
  0x83   :  { %126 = vst.msk [vmem:[%s291_s1] sm:$0xff] %vm125_vm3, %v124_v40  }
  0x86   :  { %v134_v42 = vpop.permute.xlu1 %133   ;;  %v113_v43 = vpop.permute.xlu0 %112  }
  0x87   :  { %189 = vst.msk [vmem:[%s291_s1 + $0x8] sm:$0xff] %vm104_vm2, %v113_v43  }
  0x88   :  { %190 = vst.msk [vmem:[%s291_s1 + $0x8] sm:$0xff] %vm125_vm3, %v134_v42  }
  0x8a   :  { %v155_v44 = vpop.permute.xlu1 %154   ;;  %v145_v45 = vpop.permute.xlu0 %144  }
  0x8b   :  { %191 = vst.msk [vmem:[%s291_s1 + $0x8] sm:$0xff] %vm146_vm4, %v155_v44   ;;  %147 = vst.msk [vmem:[%s291_s1] sm:$0xff] %vm146_vm4, %v145_v45  }

// kernel: roberta_with_numerical_features.1
= control target key start
LH: loop header
LB: loop body
LE: loop exit
PB: predicated region body
PF: predicated region fallthrough
CT: control target
= control target key end

     0   :  { %vm93_vm0 = vcmask 261120   ;;  %v89_v6 = vlaneseq  ;;  %vm183_vm1 = vcmask 130048   ;;  %s3313_s28 = smov 96   ;;  %s3314_s29 = smov 64   ;;  %vm543_vm2 = vcmask 523264   ;;  %s4200_s8 = inlined_call_operand.vmem [shape: f32[2,32,96], index: 8, kind: input, shape index: {}]   ;;  %s4201_s0 = inlined_call_operand.vmem [shape: f32[16,32], index: 0, kind: input, shape index: {}]   ;;  %s4202_s12 = inlined_call_operand.vmem [shape: f32[2,8,128], index: 12, kind: input, shape index: {}]   ;;  %s4203_s4 = inlined_call_operand.vmem [shape: f32[64,16], index: 4, kind: input, shape index: {}]   ;;  %s4204_s5 = inlined_call_operand.vmem [shape: f32[64,32], index: 5, kind: input, shape index: {}]   ;;  %s4205_s1 = inlined_call_operand.vmem [shape: f32[16,64], index: 1, kind: input, shape index: {}]   ;;  %s4206_s6 = inlined_call_operand.vmem [shape: f32[64,64], index: 6, kind: input, shape index: {}]   ;;  %s4207_s9 = inlined_call_operand.vmem [shape: f32[2,32,32], index: 9, kind: input, shape index: {}]   ;;  %s4208_s10 = inlined_call_operand.vmem [shape: f32[2,32,128], index: 10, kind: input, shape index: {}]   ;;  %s4209_s11 = inlined_call_operand.vmem [shape: f32[2,128,32], index: 11, kind: input, shape index: {}]   ;;  %s4210_s7 = inlined_call_operand.vmem [shape: f32[2,16], index: 7, kind: input, shape index: {}]   ;;  %s4211_s13 = inlined_call_operand.vmem [shape: f32[36,128], index: 13, kind: input, shape index: {}]   ;;  %s4212_s2 = inlined_call_operand.vmem [shape: f32[2,4], index: 2, kind: input, shape index: {}]   ;;  %s4213_s14 = inlined_call_operand.vmem [shape: f32[128,64], index: 14, kind: input, shape index: {}]   ;;  %s4214_s15 = inlined_call_operand.vmem [shape: f32[64,128], index: 15, kind: input, shape index: {}]   ;;  %s4215_s16 = inlined_call_operand.vmem [shape: f32[3,128], index: 16, kind: input, shape index: {}]   ;;  %s4216_s17 = inlined_call_operand.vmem [shape: f32[8,128], index: 17, kind: output, shape index: {}]   ;;  %s4217_s3 = inlined_call_operand.vmem [shape: s32[2,1], index: 3, kind: input, shape index: {}]  }
   0x1   :  { %4220 = sst [smem:[#allocation2_spill]] %s4200_s8  ;;  %v3444_v9 = vld [vmem:[%s4202_s12] sm:$0xff]  ;;  %v3470_v18 = vld [vmem:[%s4203_s4 + $0x8] sm:$0xff]  ;;  %v3475_v19 = vld [vmem:[%s4203_s4 + $0x10] sm:$0xff]  ;;  %vm3316_vm3 = vmmov 0   ;;  %vm2166_vm4 = vcmask 1043456  }
   0x2   :  { %4221 = sst [smem:[#allocation3_spill]] %s4201_s0  ;;  %v3436_v7 = vshrl.u32 %v89_v6, 7  ;;  %v3449_v10 = vld [vmem:[%s4203_s4] sm:$0xff]  ;;  %v3484_v21 = vld [vmem:[%s4203_s4 + $0x18] sm:$0xff]  ;;  %v3498_v23 = vld [vmem:[%s4203_s4 + $0x28] sm:$0xff]  ;;  %vm2162_vm5 = vcmask 31744  }
   0x3   :  { %s4222_s26 = sld [smem:[#allocation2_spill]]  ;;  %2883 = vmatprep.mubr.msk.f32.mxu1 %vm183_vm1, %v3449_v10  ;;  %v3489_v22 = vld [vmem:[%s4203_s4 + $0x20] sm:$0xff]  ;;  %v3503_v24 = vld [vmem:[%s4203_s4 + $0x30] sm:$0xff]  ;;  %v3512_v25 = vld [vmem:[%s4203_s4 + $0x38] sm:$0xff]  ;;  %vm2498_vm7 = vcmask 9216   ;;  %vm2532_vm10 = vcmask 1024  }
   0x4   :  { %s4223_s30 = sld [smem:[#allocation3_spill]]  ;;  %v3439_v8 = vsub.s32 0, %v3436_v7  ;;  %v3521_v32 = vld [vmem:[%s4204_s5 + $0x38] sm:$0xff]  ;;  %v3526_v34 = vld [vmem:[%s4204_s5 + $0x30] sm:$0xff]  ;;  %v3534_v38 = vld [vmem:[%s4204_s5 + $0x28] sm:$0xff] }
   0x5   :  { %v3542_v40 = vld [vmem:[%s4204_s5 + $0x20] sm:$0xff]  ;;  %v3550_v42 = vld [vmem:[%s4204_s5 + $0x18] sm:$0xff]  ;;  %v3558_v44 = vld [vmem:[%s4204_s5 + $0x10] sm:$0xff] }
   0x6   :  { %v92_v11 = vrot.slane %v3444_v9, %v3439_v8  ;;  %v3566_v46 = vld [vmem:[%s4204_s5 + $0x8] sm:$0xff]  ;;  %v3574_v48 = vld [vmem:[%s4204_s5] sm:$0xff] }
   0x7   :  { %v3587_v50 = vld [vmem:[%s4205_s1 + $0x8] sm:$0xff]  ;;  %v3592_v52 = vld [vmem:[%s4205_s1] sm:$0xff] }
   0x9   :  { %v88_v0 = vld [vmem:[%s4222_s26 + $0x18] sm:$0xff]  ;;  %v87_v1 = vld [vmem:[%s4222_s26 + $0x10] sm:$0xff]  ;;  %v86_v3 = vld [vmem:[%s4222_s26 + $0x8] sm:$0xff] }
   0xa   :  { %2868 = vmatprep.subr.mxu0 %v88_v0  ;;  %v3418_v2 = vld [vmem:[%s4223_s30] sm:$0xff]  ;;  %v3431_v5 = vld [vmem:[%s4223_s30 + $0x8] sm:$0xff] }
   0xb   :  { %2869 = vmatpush3.msra.mxu0 %v88_v0  ;;  %2876 = vmatprep.mubr.msk.f32.mxu0 %vm93_vm0, %v3418_v2  ;;  %v85_v4 = vld [vmem:[%s4222_s26] sm:$0xff]  ;;  %v3603_v0 = vld [vmem:[%s4206_s6 + $0x38] sm:$0xff] }
   0xc   :  { %2870 = vmatprep.subr.mxu0 %v87_v1 }
   0xd   :  { %2871 = vmatpush3.msra.mxu0 %v87_v1 }
   0xe   :  { %2872 = vmatprep.subr.mxu0 %v86_v3 }
   0xf   :  { %2873 = vmatpush3.msra.mxu0 %v86_v3  ;;  %v3608_v3 = vld [vmem:[%s4206_s6 + $0x30] sm:$0xff] }
  0x10   :  { %2874 = vmatprep.subr.mxu0 %v85_v4 }
  0x11   :  { %2875 = vmatpush3.msra.mxu0 %v85_v4  ;;  %v3619_v4 = vld [vmem:[%s4206_s6 + $0x28] sm:$0xff] }
  0x12   :  { %2877 = vmatmul.mubr.msk.f32.vlgmr.msra.gmra.mxu0 %vm93_vm0, %v3431_v5 }
  0x13   :  { %2899 = vmatprep.mubr.msk.f32.mxu0 %vm183_vm1, %v3449_v10 }
  0xd2   :  { %v2878_v12 = vpop.f32.mrf.mxu0 }
  0xd3   :  { %v3457_v13 = vadd.f32 %v2878_v12, %v92_v11  ;;  %v3637_v12 = vld [vmem:[%s4206_s6 + $0x18] sm:$0xff] }
  0xd4   :  { %v166_v14 = vpop.f32.mrf.mxu0 }
  0xd5   :  { %179 = vrot.lane.b32.xlu0 %v3457_v13, %s3313_s28  ;;  %v3461_v15 = vadd.f32 %v166_v14, %v92_v11  ;;  %v3626_v11 = vld [vmem:[%s4206_s6 + $0x20] sm:$0xff]  ;;  %v3655_v14 = vld [vmem:[%s4206_s6 + $0x8] sm:$0xff] }
  0xd9   :  { %177 = vrot.lane.b32.xlu0 %v3461_v15, %s3313_s28 }
  0xdd   :  { %323 = vrot.lane.b32.xlu0 %v3457_v13, %s3314_s29 }
 0x147   :  { %v180_v16 = vpop.permute.xlu0 %179 }
 0x148   :  { %2879 = vmatprep.subr.mxu1 %v180_v16 }
 0x149   :  { %2880 = vmatpush3.msra.mxu1 %v180_v16  ;;  %v3662_v16 = vld [vmem:[%s4206_s6] sm:$0xff] }
 0x14b   :  { %v178_v17 = vpop.permute.xlu0 %177 }
 0x14c   :  { %2881 = vmatprep.subr.mxu1 %v178_v17 }
 0x14d   :  { %2882 = vmatpush3.msra.mxu1 %v178_v17 }
 0x14e   :  { %2884 = vmatmul.mubr.msk.f32.vlgmr.msra.gmra.mxu1 %vm183_vm1, %v3470_v18 }
 0x14f   :  { %v324_v20 = vpop.permute.xlu0 %323  ;;  %2886 = vmatprep.mubr.msk.f32.mxu1 %vm183_vm1, %v3475_v19 }
 0x150   :  { %2895 = vmatprep.subr.mxu0 %v324_v20 }
 0x151   :  { %2896 = vmatpush3.msra.mxu0 %v324_v20  ;;  %v725_v20 = vld [vmem:[%s4207_s9 + $0x18] sm:$0xff] }
 0x152   :  { %2887 = vmatmul.mubr.msk.f32.gmra.mxu1 %vm183_vm1, %v3484_v21 }
 0x153   :  { %2889 = vmatprep.mubr.msk.f32.mxu1 %vm183_vm1, %v3489_v22 }
 0x156   :  { %2890 = vmatmul.mubr.msk.f32.gmra.mxu1 %vm183_vm1, %v3498_v23 }
 0x157   :  { %2892 = vmatprep.mubr.msk.f32.mxu1 %vm183_vm1, %v3503_v24 }
 0x15a   :  { %2893 = vmatmul.mubr.msk.f32.gmra.mxu1 %vm183_vm1, %v3512_v25 }
 0x15b   :  { %2927 = vmatprep.mubr.msk.f32.mxu1 %vm93_vm0, %v3461_v15 }
 0x20e   :  { %v2885_v26 = vpop.f32.mrf.mxu1 }
 0x20f   :  { %v314_v47 = vmul.f32 %v2885_v26, %v3566_v46  ;;  %v724_v26 = vld [vmem:[%s4207_s9 + $0x10] sm:$0xff] }
 0x210   :  { %v274_v27 = vpop.f32.mrf.mxu1 }
 0x211   :  { %v313_v49 = vmul.f32 %v274_v27, %v3574_v48 }
 0x212   :  { %v2888_v28 = vpop.f32.mrf.mxu1 }
 0x213   :  { %v316_v43 = vmul.f32 %v2888_v28, %v3550_v42 }
 0x214   :  { %v284_v29 = vpop.f32.mrf.mxu1 }
 0x215   :  { %v315_v45 = vmul.f32 %v284_v29, %v3558_v44 }
 0x216   :  { %v2891_v30 = vpop.f32.mrf.mxu1 }
 0x217   :  { %v318_v39 = vmul.f32 %v2891_v30, %v3534_v38 }
 0x218   :  { %v294_v31 = vpop.f32.mrf.mxu1 }
 0x219   :  { %v317_v41 = vmul.f32 %v294_v31, %v3542_v40 }
 0x21a   :  { %v2894_v33 = vpop.f32.mrf.mxu1 }
 0x21b   :  { %v320_v35 = vmul.f32 %v2894_v33, %v3521_v32 }
 0x21c   :  { %v304_v36 = vpop.f32.mrf.mxu1 }
 0x21d   :  { %v319_v37 = vmul.f32 %v304_v36, %v3526_v34  ;;  %2911 = vmatprep.subr.msk.mxu1 %vm93_vm0, %v320_v35 }
 0x21e   :  { %2912 = vmatpush3.xpose.msk.msra.mxu1 %vm93_vm0, %v320_v35 }
 0x21f   :  { %2913 = vmatprep.subr.msk.mxu1 %vm93_vm0, %v319_v37 }
 0x222   :  { %2914 = vmatpush3.xpose.msk.msra.mxu1 %vm93_vm0, %v319_v37 }
 0x223   :  { %2915 = vmatprep.subr.msk.mxu1 %vm93_vm0, %v318_v39 }
 0x226   :  { %2916 = vmatpush3.xpose.msk.msra.mxu1 %vm93_vm0, %v318_v39 }
 0x227   :  { %2917 = vmatprep.subr.msk.mxu1 %vm93_vm0, %v317_v41 }
 0x22a   :  { %2918 = vmatpush3.xpose.msk.msra.mxu1 %vm93_vm0, %v317_v41 }
 0x22b   :  { %2919 = vmatprep.subr.msk.mxu1 %vm93_vm0, %v316_v43 }
 0x22e   :  { %2920 = vmatpush3.xpose.msk.msra.mxu1 %vm93_vm0, %v316_v43 }
 0x22f   :  { %2921 = vmatprep.subr.msk.mxu1 %vm93_vm0, %v315_v45 }
 0x232   :  { %2922 = vmatpush3.xpose.msk.msra.mxu1 %vm93_vm0, %v315_v45 }
 0x233   :  { %2923 = vmatprep.subr.msk.mxu1 %vm93_vm0, %v314_v47 }
 0x236   :  { %2924 = vmatpush3.xpose.msk.msra.mxu1 %vm93_vm0, %v314_v47 }
 0x237   :  { %2925 = vmatprep.subr.msk.mxu1 %vm93_vm0, %v313_v49 }
 0x23a   :  { %2926 = vmatpush3.xpose.msk.msra.mxu1 %vm93_vm0, %v313_v49 }
 0x23b   :  { %2968 = vmatprep.subr.mxu1 %v725_v20 }
 0x23d   :  { %2928 = vmatmul.mubr.msk.f32.vlgmr.msra.gmra.mxu1 %vm93_vm0, %v3457_v13  ;;  %v3644_v13 = vld [vmem:[%s4206_s6 + $0x10] sm:$0xff] }
 0x23e   :  { %2969 = vmatpush3.msra.mxu1 %v725_v20 }
 0x23f   :  { %2970 = vmatprep.subr.mxu1 %v724_v26 }
 0x240   :  { %2971 = vmatpush3.msra.mxu1 %v724_v26 }
 0x2fd   :  { %v2929_v51 = vpop.f32.mrf.mxu1 }
 0x2fe   :  { %v540_v53 = vadd.f32 %v2929_v51, %v3587_v50 }
 0x2ff   :  { %v534_v54 = vpop.f32.mrf.mxu1 }
 0x300   :  { %v535_v55 = vadd.f32 %v534_v54, %v3592_v52  ;;  %v547_v56 = vsel %vm543_vm2, %v540_v53, -inf }
 0x301   :  { %548 = vmax.xlane.f32.xlu1 %v547_v56 }
 0x302   :  { %v544_v57 = vsel %vm543_vm2, %v535_v55, -inf }
 0x305   :  { %545 = vmax.xlane.f32.xlu1 %v544_v57 }
 0x316   :  { %321 = vrot.lane.b32.xlu1 %v3461_v15, %s3314_s29 }
 0x38a   :  { %v549_v58 = vpop.xlane.xlu1 %548 }
 0x38b   :  { %v551_v60 = vsub.f32 %v540_v53, %v549_v58 }
 0x38d   :  { %v554_v1 = vmul.f32 1.442695, %v551_v60  ;;  %v722_v60 = vld [vmem:[%s4207_s9] sm:$0xff] }
 0x38e   :  { %v546_v59 = vpop.xlane.xlu1 %545 }
 0x38f   :  { %v550_v61 = vsub.f32 %v535_v55, %v546_v59  ;;  %v723_v59 = vld [vmem:[%s4207_s9 + $0x8] sm:$0xff] }
 0x390   :  { %2972 = vmatprep.subr.mxu1 %v723_v59 }
 0x391   :  { %v552_v62 = vmul.f32 1.442695, %v550_v61  ;;  %2973 = vmatpush3.msra.mxu1 %v723_v59  ;;  %v842_v59 = vsub.s32 3, %v3436_v7 }
 0x392   :  { %v322_v63 = vpop.permute.xlu1 %321  ;;  %2974 = vmatprep.subr.mxu1 %v722_v60 }
 0x393   :  { %3267 = vpow2.f32 %v552_v62  ;;  %2897 = vmatprep.subr.mxu0 %v322_v63  ;;  %2975 = vmatpush3.msra.mxu1 %v722_v60  ;;  %v848_v60 = vsub.s32 4, %v3436_v7 }
 0x394   :  { %2898 = vmatpush3.msra.mxu0 %v322_v63  ;;  %3269 = vpow2.f32 %v554_v1  ;;  %v3697_v63 = vsub.s32 2, %v3436_v7 }
 0x395   :  { %2900 = vmatmul.mubr.msk.f32.vlgmr.msra.gmra.mxu0 %vm183_vm1, %v3470_v18  ;;  %2930 = vmatprep.subr.mxu0 %v3603_v0 }
 0x396   :  { %2931 = vmatpush3.msra.mxu0 %v3603_v0  ;;  %2902 = vmatprep.mubr.msk.f32.mxu0 %vm183_vm1, %v3475_v19  ;;  %v729_v1 = vrot.slane %v3444_v9, %v3697_v63 }
 0x397   :  { %2932 = vmatprep.subr.mxu0 %v3608_v3 }
 0x398   :  { %2933 = vmatpush3.msra.mxu0 %v3608_v3 }
 0x399   :  { %2903 = vmatmul.mubr.msk.f32.gmra.mxu0 %vm183_vm1, %v3484_v21  ;;  %2934 = vmatprep.subr.mxu0 %v3619_v4 }
 0x39a   :  { %2935 = vmatpush3.msra.mxu0 %v3619_v4  ;;  %2905 = vmatprep.mubr.msk.f32.mxu0 %vm183_vm1, %v3489_v22 }
 0x39b   :  { %2936 = vmatprep.subr.mxu0 %v3626_v11 }
 0x39c   :  { %2937 = vmatpush3.msra.mxu0 %v3626_v11 }
 0x39d   :  { %2906 = vmatmul.mubr.msk.f32.gmra.mxu0 %vm183_vm1, %v3498_v23  ;;  %2938 = vmatprep.subr.mxu0 %v3637_v12 }
 0x39e   :  { %2939 = vmatpush3.msra.mxu0 %v3637_v12  ;;  %2908 = vmatprep.mubr.msk.f32.mxu0 %vm183_vm1, %v3503_v24 }
 0x39f   :  { %2940 = vmatprep.subr.mxu0 %v3644_v13 }
 0x3a0   :  { %v3268_v15 = vpop.eup %3267  ;;  %2941 = vmatpush3.msra.mxu0 %v3644_v13 }
 0x3a1   :  { %2909 = vmatmul.mubr.msk.f32.gmra.mxu0 %vm183_vm1, %v3512_v25  ;;  %2942 = vmatprep.subr.mxu0 %v3655_v14  ;;  %v3270_v17 = vpop.eup %3269 }
 0x3a2   :  { %2943 = vmatpush3.msra.mxu0 %v3655_v14  ;;  %2946 = vmatprep.mubr.msk.f32.mxu0 %vm543_vm2, %v3268_v15 }
 0x3a3   :  { %2944 = vmatprep.subr.mxu0 %v3662_v16 }
 0x3a4   :  { %2945 = vmatpush3.msra.mxu0 %v3662_v16 }
 0x3a5   :  { %2947 = vmatmul.mubr.msk.f32.vlgmr.msra.gmra.mxu0 %vm543_vm2, %v3270_v17 }
 0x455   :  { %v2901_v27 = vpop.f32.mrf.mxu0 }
 0x456   :  { %v433_v53 = vmul.f32 %v2901_v27, %v3566_v46 }
 0x457   :  { %v393_v28 = vpop.f32.mrf.mxu0 }
 0x458   :  { %v432_v54 = vmul.f32 %v393_v28, %v3574_v48 }
 0x459   :  { %v2904_v29 = vpop.f32.mrf.mxu0 }
 0x45a   :  { %v435_v49 = vmul.f32 %v2904_v29, %v3550_v42 }
 0x45b   :  { %v403_v30 = vpop.f32.mrf.mxu0 }
 0x45c   :  { %v434_v51 = vmul.f32 %v403_v30, %v3558_v44 }
 0x45d   :  { %v2907_v31 = vpop.f32.mrf.mxu0 }
 0x45e   :  { %v437_v43 = vmul.f32 %v2907_v31, %v3534_v38 }
 0x45f   :  { %v413_v33 = vpop.f32.mrf.mxu0 }
 0x460   :  { %v436_v47 = vmul.f32 %v413_v33, %v3542_v40 }
 0x461   :  { %v2910_v35 = vpop.f32.mrf.mxu0 }
 0x462   :  { %v439_v36 = vmul.f32 %v2910_v35, %v3521_v32 }
 0x463   :  { %v423_v37 = vpop.f32.mrf.mxu0 }
 0x464   :  { %v438_v39 = vmul.f32 %v423_v37, %v3526_v34  ;;  %2949 = vmatprep.subr.mxu0 %v439_v36 }
 0x465   :  { %v2948_v41 = vpop.f32.mrf.mxu0  ;;  %2950 = vmatpush3.msra.mxu0 %v439_v36 }
 0x466   :  { %2951 = vmatprep.subr.mxu0 %v438_v39  ;;  %3271 = vrcp.f32 %v2948_v41 }
 0x467   :  { %v628_v45 = vpop.f32.mrf.mxu0  ;;  %2952 = vmatpush3.msra.mxu0 %v438_v39 }
 0x468   :  { %3273 = vrcp.f32 %v628_v45  ;;  %2953 = vmatprep.subr.mxu0 %v437_v43 }
 0x469   :  { %2954 = vmatpush3.msra.mxu0 %v437_v43 }
 0x46a   :  { %2955 = vmatprep.subr.mxu0 %v436_v47 }
 0x46b   :  { %2956 = vmatpush3.msra.mxu0 %v436_v47  ;;  %v854_v47 = vld [vmem:[%s4208_s10 + $0x10] sm:$0xff] }
 0x46c   :  { %2957 = vmatprep.subr.mxu0 %v435_v49 }
 0x46d   :  { %2958 = vmatpush3.msra.mxu0 %v435_v49  ;;  %v853_v49 = vld [vmem:[%s4208_s10 + $0x8] sm:$0xff] }
 0x46e   :  { %2959 = vmatprep.subr.mxu0 %v434_v51 }
 0x46f   :  { %2960 = vmatpush3.msra.mxu0 %v434_v51  ;;  %v852_v51 = vld [vmem:[%s4208_s10] sm:$0xff] }
 0x470   :  { %2961 = vmatprep.subr.mxu0 %v433_v53 }
 0x471   :  { %2962 = vmatpush3.msra.mxu0 %v433_v53 }
 0x472   :  { %2963 = vmatprep.subr.mxu0 %v432_v54 }
 0x473   :  { %2964 = vmatpush3.msra.mxu0 %v432_v54  ;;  %v3272_v55 = vpop.eup %3271 }
 0x474   :  { %v640_v58 = vmul.f32 %v3272_v55, %v3270_v17 }
 0x475   :  { %v3274_v56 = vpop.eup %3273 }
 0x476   :  { %v639_v57 = vmul.f32 %v3274_v56, %v3268_v15 }
 0x478   :  { %2965 = vmatprep.mubr.msk.f32.mxu0 %vm543_vm2, %v639_v57 }
 0x479   :  { %2966 = vmatmul.mubr.msk.f32.vlgmr.msra.gmra.mxu0 %vm543_vm2, %v640_v58 }
 0x539   :  { %v2967_v61 = vpop.f32.mrf.mxu0 }
 0x53b   :  { %v713_v62 = vpop.f32.mrf.mxu0 }
 0x53c   :  { %2976 = vmatprep.mubr.msk.f32.mxu1 %vm93_vm0, %v713_v62 }
 0x53d   :  { %2977 = vmatmul.mubr.msk.f32.vlgmr.msra.gmra.mxu1 %vm93_vm0, %v2967_v61  ;;  %v843_v61 = vrot.slane %v3444_v9, %v842_v59 }
 0x5fd   :  { %v2978_v15 = vpop.f32.mrf.mxu1 }
 0x5fe   :  { %v808_v17 = vadd.f32 %v2978_v15, %v729_v1  ;;  %v849_v15 = vrot.slane %v3444_v9, %v848_v60 }
 0x5ff   :  { %v802_v20 = vpop.f32.mrf.mxu1 }
 0x600   :  { %v803_v26 = vadd.f32 %v802_v20, %v729_v1  ;;  %v812_v27 = vadd.f32 %v808_v17, %v3431_v5 }
 0x602   :  { %v816_v28 = vsel %vm93_vm0, %v812_v27, 0.0  ;;  %v811_v29 = vadd.f32 %v803_v26, %v3418_v2  ;;  %v855_v2 = vld [vmem:[%s4208_s10 + $0x18] sm:$0xff] }
 0x603   :  { %817 = vadd.xlane.f32.xlu1 %v816_v28  ;;  %2979 = vmatprep.subr.mxu0 %v855_v2 }
 0x604   :  { %v813_v30 = vsel %vm93_vm0, %v811_v29, 0.0  ;;  %2980 = vmatpush3.msra.mxu0 %v855_v2  ;;  %v963_v2 = vld [vmem:[%s4209_s11 + $0x20] sm:$0xff] }
 0x605   :  { %814 = vadd.xlane.f32.xlu0 %v813_v30  ;;  %2981 = vmatprep.subr.mxu0 %v854_v47  ;;  %v974_v30 = vld [vmem:[%s4209_s11 + $0x78] sm:$0xff] }
 0x606   :  { %2982 = vmatpush3.msra.mxu0 %v854_v47  ;;  %2990 = vmatprep.subr.mxu1 %v974_v30  ;;  %v962_v47 = vld [vmem:[%s4209_s11 + $0x18] sm:$0xff] }
 0x607   :  { %2983 = vmatprep.subr.mxu0 %v853_v49  ;;  %2991 = vmatpush3.msra.mxu1 %v974_v30 }
 0x608   :  { %2984 = vmatpush3.msra.mxu0 %v853_v49  ;;  %v961_v49 = vld [vmem:[%s4209_s11 + $0x10] sm:$0xff] }
 0x609   :  { %2985 = vmatprep.subr.mxu0 %v852_v51 }
 0x60a   :  { %2986 = vmatpush3.msra.mxu0 %v852_v51  ;;  %v960_v51 = vld [vmem:[%s4209_s11 + $0x8] sm:$0xff] }
 0x68c   :  { %v818_v31 = vpop.xlane.xlu1 %817 }
 0x68d   :  { %v821_v33 = vmul.f32 0.03125, %v818_v31  ;;  %v973_v31 = vld [vmem:[%s4209_s11 + $0x70] sm:$0xff] }
 0x68e   :  { %v815_v35 = vpop.xlane.xlu0 %814  ;;  %2992 = vmatprep.subr.mxu1 %v973_v31 }
 0x68f   :  { %v820_v36 = vmul.f32 0.03125, %v815_v35  ;;  %v823_v37 = vsub.f32 %v812_v27, %v821_v33  ;;  %2993 = vmatpush3.msra.mxu1 %v973_v31  ;;  %v972_v33 = vld [vmem:[%s4209_s11 + $0x68] sm:$0xff]  ;;  %v971_v35 = vld [vmem:[%s4209_s11 + $0x60] sm:$0xff] }
 0x690   :  { %2994 = vmatprep.subr.mxu1 %v972_v33 }
 0x691   :  { %v822_v39 = vsub.f32 %v811_v29, %v820_v36  ;;  %v825_v45 = vmul.f32 %v823_v37, %v823_v37  ;;  %2995 = vmatpush3.msra.mxu1 %v972_v33  ;;  %v970_v36 = vld [vmem:[%s4209_s11 + $0x58] sm:$0xff] }
 0x692   :  { %2996 = vmatprep.subr.mxu1 %v971_v35 }
 0x693   :  { %v824_v41 = vmul.f32 %v822_v39, %v822_v39  ;;  %v829_v5 = vsel %vm93_vm0, %v825_v45, 0.0  ;;  %2997 = vmatpush3.msra.mxu1 %v971_v35  ;;  %v965_v45 = vld [vmem:[%s4209_s11 + $0x30] sm:$0xff] }
 0x694   :  { %2998 = vmatprep.subr.mxu1 %v970_v36 }
 0x695   :  { %v826_v43 = vsel %vm93_vm0, %v824_v41, 0.0  ;;  %2999 = vmatpush3.msra.mxu1 %v970_v36  ;;  %v967_v41 = vld [vmem:[%s4209_s11 + $0x40] sm:$0xff] }
 0x696   :  { %827 = vadd.xlane.f32.xlu0 %v826_v43  ;;  %v966_v43 = vld [vmem:[%s4209_s11 + $0x38] sm:$0xff] }
 0x69a   :  { %830 = vadd.xlane.f32.xlu0 %v829_v5  ;;  %v964_v5 = vld [vmem:[%s4209_s11 + $0x28] sm:$0xff] }
 0x71f   :  { %v828_v53 = vpop.xlane.xlu0 %827 }
 0x720   :  { %v832_v54 = vmul.f32 0.03125, %v828_v53  ;;  %v959_v53 = vld [vmem:[%s4209_s11] sm:$0xff] }
 0x722   :  { %v834_v55 = vadd.f32 1e-05, %v832_v54  ;;  %v3784_v54 = vsub.s32 1, %v3436_v7 }
 0x723   :  { %v831_v56 = vpop.xlane.xlu0 %830 }
 0x724   :  { %3275 = vrsqrt.f32 %v834_v55  ;;  %v833_v57 = vmul.f32 0.03125, %v831_v56  ;;  %v859_v55 = vrot.slane %v3444_v9, %v3784_v54 }
 0x726   :  { %v835_v58 = vadd.f32 1e-05, %v833_v57 }
 0x728   :  { %3277 = vrsqrt.f32 %v835_v58 }
 0x731   :  { %v3276_v62 = vpop.eup %3275 }
 0x732   :  { %v838_v1 = vmul.f32 %v3276_v62, %v822_v39  ;;  %v968_v39 = vld [vmem:[%s4209_s11 + $0x48] sm:$0xff] }
 0x734   :  { %v844_v17 = vmul.f32 %v843_v61, %v838_v1 }
 0x735   :  { %v3278_v20 = vpop.eup %3277 }
 0x736   :  { %v839_v26 = vmul.f32 %v3278_v20, %v823_v37  ;;  %v3727_v27 = vadd.f32 %v849_v15, %v844_v17  ;;  %v969_v37 = vld [vmem:[%s4209_s11 + $0x50] sm:$0xff] }
 0x737   :  { %3000 = vmatprep.subr.mxu1 %v969_v37 }
 0x738   :  { %v845_v28 = vmul.f32 %v843_v61, %v839_v26  ;;  %2987 = vmatprep.mubr.msk.f32.mxu0 %vm93_vm0, %v3727_v27  ;;  %3001 = vmatpush3.msra.mxu1 %v969_v37 }
 0x739   :  { %3002 = vmatprep.subr.mxu1 %v968_v39 }
 0x73a   :  { %v3731_v29 = vadd.f32 %v849_v15, %v845_v28  ;;  %3003 = vmatpush3.msra.mxu1 %v968_v39 }
 0x73b   :  { %3004 = vmatprep.subr.mxu1 %v967_v41 }
 0x73c   :  { %2988 = vmatmul.mubr.msk.f32.vlgmr.msra.gmra.mxu0 %vm93_vm0, %v3731_v29  ;;  %3005 = vmatpush3.msra.mxu1 %v967_v41 }
 0x73d   :  { %3006 = vmatprep.subr.mxu1 %v966_v43 }
 0x73e   :  { %3007 = vmatpush3.msra.mxu1 %v966_v43 }
 0x73f   :  { %3008 = vmatprep.subr.mxu1 %v965_v45 }
 0x740   :  { %3009 = vmatpush3.msra.mxu1 %v965_v45 }
 0x741   :  { %3010 = vmatprep.subr.mxu1 %v964_v5 }
 0x742   :  { %3011 = vmatpush3.msra.mxu1 %v964_v5 }
 0x743   :  { %3012 = vmatprep.subr.mxu1 %v963_v2 }
 0x744   :  { %3013 = vmatpush3.msra.mxu1 %v963_v2  ;;  %v977_v2 = vsub.s32 5, %v3436_v7 }
 0x745   :  { %3014 = vmatprep.subr.mxu1 %v962_v47 }
 0x746   :  { %3015 = vmatpush3.msra.mxu1 %v962_v47  ;;  %v978_v47 = vrot.slane %v3444_v9, %v977_v2 }
 0x747   :  { %3016 = vmatprep.subr.mxu1 %v961_v49 }
 0x748   :  { %3017 = vmatpush3.msra.mxu1 %v961_v49 }
 0x749   :  { %3018 = vmatprep.subr.mxu1 %v960_v51 }
 0x74a   :  { %3019 = vmatpush3.msra.mxu1 %v960_v51 }
 0x74b   :  { %3020 = vmatprep.subr.mxu1 %v959_v53 }
 0x74c   :  { %3021 = vmatpush3.msra.mxu1 %v959_v53 }
 0x7fc   :  { %v2989_v56 = vpop.f32.mrf.mxu0 }
 0x7fd   :  { %v938_v57 = vadd.f32 %v2989_v56, %v859_v55 }
 0x7fe   :  { %v932_v58 = vpop.f32.mrf.mxu0 }
 0x7ff   :  { %v944_v61 = vmul.f32 0.044715, %v938_v57  ;;  %v933_v62 = vadd.f32 %v932_v58, %v859_v55  ;;  %v942_v43 = vmul.f32 0.5, %v938_v57 }
 0x801   :  { %v946_v1 = vmul.f32 %v944_v61, %v938_v57  ;;  %v943_v15 = vmul.f32 0.044715, %v933_v62  ;;  %v941_v39 = vmul.f32 0.5, %v933_v62 }
 0x803   :  { %v948_v17 = vmul.f32 %v946_v1, %v938_v57  ;;  %v945_v20 = vmul.f32 %v943_v15, %v933_v62 }
 0x805   :  { %v950_v26 = vadd.f32 %v948_v17, %v938_v57  ;;  %v947_v28 = vmul.f32 %v945_v20, %v933_v62 }
 0x807   :  { %v949_v30 = vadd.f32 %v947_v28, %v933_v62  ;;  %v952_v31 = vmul.f32 0.7978846, %v950_v26 }
 0x809   :  { %v951_v33 = vmul.f32 0.7978846, %v949_v30  ;;  %3279 = vtanh.f32 %v952_v31 }
 0x80b   :  { %3281 = vtanh.f32 %v951_v33  ;;  %v2592_v33 = vld [vmem:[%s4222_s26 + $0x30] sm:$0xff] }
 0x816   :  { %v3280_v35 = vpop.eup %3279 }
 0x817   :  { %v956_v37 = vadd.f32 1.0, %v3280_v35  ;;  %v2591_v35 = vld [vmem:[%s4222_s26 + $0x28] sm:$0xff] }
 0x818   :  { %v3282_v36 = vpop.eup %3281 }
 0x819   :  { %v955_v41 = vadd.f32 1.0, %v3282_v36  ;;  %v958_v5 = vmul.f32 %v956_v37, %v942_v43  ;;  %v2590_v36 = vld [vmem:[%s4222_s26 + $0x20] sm:$0xff] }
 0x81b   :  { %v957_v45 = vmul.f32 %v955_v41, %v941_v39 }
 0x81d   :  { %3022 = vmatprep.mubr.f32.mxu1 %v957_v45 }
 0x81e   :  { %3023 = vmatmul.mubr.f32.vlgmr.msra.gmra.mxu1 %v958_v5 }
 0x8de   :  { %v3024_v49 = vpop.f32.mrf.mxu1 }
 0x8df   :  { %v1051_v53 = vadd.f32 %v3024_v49, %v978_v47  ;;  %v1090_v49 = vsub.s32 7, %v3436_v7 }
 0x8e0   :  { %v1045_v51 = vpop.f32.mrf.mxu1 }
 0x8e1   :  { %v1046_v55 = vadd.f32 %v1045_v51, %v978_v47  ;;  %v1055_v57 = vadd.f32 %v1051_v53, %v3731_v29  ;;  %v2593_v29 = vld [vmem:[%s4222_s26 + $0x38] sm:$0xff]  ;;  %v1084_v47 = vsub.s32 6, %v3436_v7  ;;  %v2160_v7 = vld [vmem:[%s4212_s2] sm:$0x3] }
 0x8e2   :  { %3025 = vmatprep.subr.mxu0 %v2593_v29 }
 0x8e3   :  { %v1054_v56 = vadd.f32 %v1046_v55, %v3727_v27  ;;  %v1059_v61 = vsel %vm93_vm0, %v1055_v57, 0.0  ;;  %3026 = vmatpush3.msra.mxu0 %v2593_v29  ;;  %v1085_v51 = vrot.slane %v3444_v9, %v1084_v47 }
 0x8e4   :  { %3027 = vmatprep.subr.mxu0 %v2592_v33 }
 0x8e5   :  { %v1056_v58 = vsel %vm93_vm0, %v1054_v56, 0.0  ;;  %3028 = vmatpush3.msra.mxu0 %v2592_v33 }
 0x8e6   :  { %1057 = vadd.xlane.f32.xlu0 %v1056_v58  ;;  %3029 = vmatprep.subr.mxu0 %v2591_v35 }
 0x8e7   :  { %3030 = vmatpush3.msra.mxu0 %v2591_v35 }
 0x8e8   :  { %3031 = vmatprep.subr.mxu0 %v2590_v36 }
 0x8e9   :  { %3032 = vmatpush3.msra.mxu0 %v2590_v36 }
 0x8ea   :  { %1060 = vadd.xlane.f32.xlu0 %v1059_v61 }
 0x96f   :  { %v1058_v62 = vpop.xlane.xlu0 %1057 }
 0x970   :  { %v1062_v1 = vmul.f32 0.03125, %v1058_v62 }
 0x972   :  { %v1064_v15 = vsub.f32 %v1054_v56, %v1062_v1  ;;  %v1091_v56 = vrot.slane %v3444_v9, %v1090_v49  ;;  %v3831_v9 = vld [vmem:[%s4202_s12 + $0x8] sm:$0xff] }
 0x973   :  { %v1061_v17 = vpop.xlane.xlu0 %1060 }
 0x974   :  { %v1063_v20 = vmul.f32 0.03125, %v1061_v17  ;;  %v1066_v26 = vmul.f32 %v1064_v15, %v1064_v15 }
 0x976   :  { %v1065_v28 = vsub.f32 %v1055_v57, %v1063_v20  ;;  %v1068_v30 = vsel %vm93_vm0, %v1066_v26, 0.0 }
 0x977   :  { %1069 = vadd.xlane.f32.xlu0 %v1068_v30 }
 0x978   :  { %v1067_v31 = vmul.f32 %v1065_v28, %v1065_v28 }
 0x97a   :  { %v1071_v27 = vsel %vm93_vm0, %v1067_v31, 0.0 }
 0x97b   :  { %1072 = vadd.xlane.f32.xlu1 %v1071_v27 }
 0xa00   :  { %v1070_v37 = vpop.xlane.xlu0 %1069 }
 0xa01   :  { %v1074_v39 = vmul.f32 0.03125, %v1070_v37 }
 0xa03   :  { %v1076_v41 = vadd.f32 1e-05, %v1074_v39 }
 0xa04   :  { %v1073_v43 = vpop.xlane.xlu1 %1072 }
 0xa05   :  { %3283 = vrsqrt.f32 %v1076_v41  ;;  %v1075_v45 = vmul.f32 0.03125, %v1073_v43 }
 0xa07   :  { %v1077_v5 = vadd.f32 1e-05, %v1075_v45 }
 0xa09   :  { %3285 = vrsqrt.f32 %v1077_v5 }
 0xa12   :  { %v3284_v53 = vpop.eup %3283 }
 0xa13   :  { %v1080_v55 = vmul.f32 %v3284_v53, %v1064_v15  ;;  %v1104_v15 = vrot.slane %v3831_v9, %v3439_v8 }
 0xa15   :  { %v1086_v58 = vmul.f32 %v1085_v51, %v1080_v55 }
 0xa16   :  { %v3286_v57 = vpop.eup %3285 }
 0xa17   :  { %v1081_v61 = vmul.f32 %v3286_v57, %v1065_v28  ;;  %v3818_v62 = vadd.f32 %v1091_v56, %v1086_v58 }
 0xa19   :  { %v1087_v1 = vmul.f32 %v1085_v51, %v1081_v61  ;;  %3033 = vmatprep.mubr.msk.f32.mxu0 %vm93_vm0, %v3818_v62 }
 0xa1b   :  { %v3822_v17 = vadd.f32 %v1091_v56, %v1087_v1 }
 0xa1d   :  { %3034 = vmatmul.mubr.msk.f32.vlgmr.msra.gmra.mxu0 %vm93_vm0, %v3822_v17 }
 0xa1e   :  { %3040 = vmatprep.mubr.msk.f32.mxu0 %vm183_vm1, %v3449_v10 }
 0xadd   :  { %v3035_v20 = vpop.f32.mrf.mxu0 }
 0xade   :  { %v1183_v26 = vadd.f32 %v3035_v20, %v1104_v15 }
 0xadf   :  { %v1177_v28 = vpop.f32.mrf.mxu0 }
 0xae0   :  { %v1178_v30 = vadd.f32 %v1177_v28, %v1104_v15  ;;  %1190 = vrot.lane.b32.xlu0 %v1183_v26, %s3313_s28 }
 0xae2   :  { %1188 = vrot.lane.b32.xlu1 %v1178_v30, %s3313_s28  ;;  %3084 = vmatprep.mubr.msk.f32.mxu1 %vm93_vm0, %v1178_v30 }
 0xb52   :  { %v1191_v31 = vpop.permute.xlu0 %1190 }
 0xb53   :  { %3036 = vmatprep.subr.mxu0 %v1191_v31 }
 0xb54   :  { %3037 = vmatpush3.msra.mxu0 %v1191_v31  ;;  %v1189_v27 = vpop.permute.xlu1 %1188 }
 0xb55   :  { %3038 = vmatprep.subr.mxu0 %v1189_v27 }
 0xb56   :  { %3039 = vmatpush3.msra.mxu0 %v1189_v27 }
 0xb57   :  { %3041 = vmatmul.mubr.msk.f32.vlgmr.msra.gmra.mxu0 %vm183_vm1, %v3470_v18 }
 0xb58   :  { %3043 = vmatprep.mubr.msk.f32.mxu0 %vm183_vm1, %v3475_v19 }
 0xb5b   :  { %3044 = vmatmul.mubr.msk.f32.gmra.mxu0 %vm183_vm1, %v3484_v21 }
 0xb5c   :  { %3046 = vmatprep.mubr.msk.f32.mxu0 %vm183_vm1, %v3489_v22 }
 0xb5f   :  { %3047 = vmatmul.mubr.msk.f32.gmra.mxu0 %vm183_vm1, %v3498_v23 }
 0xb60   :  { %3049 = vmatprep.mubr.msk.f32.mxu0 %vm183_vm1, %v3503_v24 }
 0xb63   :  { %3050 = vmatmul.mubr.msk.f32.gmra.mxu0 %vm183_vm1, %v3512_v25 }
 0xb64   :  { %3056 = vmatprep.mubr.msk.f32.mxu0 %vm183_vm1, %v3449_v10 }
 0xc17   :  { %v3042_v29 = vpop.f32.mrf.mxu0 }
 0xc18   :  { %v1300_v56 = vmul.f32 %v3042_v29, %v3566_v46 }
 0xc19   :  { %v1260_v33 = vpop.f32.mrf.mxu0 }
 0xc1a   :  { %v1299_v58 = vmul.f32 %v1260_v33, %v3574_v48 }
 0xc1b   :  { %v3045_v35 = vpop.f32.mrf.mxu0 }
 0xc1c   :  { %v1302_v53 = vmul.f32 %v3045_v35, %v3550_v42 }
 0xc1d   :  { %v1270_v36 = vpop.f32.mrf.mxu0 }
 0xc1e   :  { %v1301_v55 = vmul.f32 %v1270_v36, %v3558_v44 }
 0xc1f   :  { %v3048_v37 = vpop.f32.mrf.mxu0 }
 0xc20   :  { %v1304_v10 = vmul.f32 %v3048_v37, %v3534_v38 }
 0xc21   :  { %v1280_v39 = vpop.f32.mrf.mxu0 }
 0xc22   :  { %v1303_v51 = vmul.f32 %v1280_v39, %v3542_v40 }
 0xc23   :  { %v3051_v41 = vpop.f32.mrf.mxu0 }
 0xc24   :  { %v1306_v43 = vmul.f32 %v3051_v41, %v3521_v32 }
 0xc25   :  { %v1290_v45 = vpop.f32.mrf.mxu0 }
 0xc26   :  { %v1305_v5 = vmul.f32 %v1290_v45, %v3526_v34  ;;  %3068 = vmatprep.subr.msk.mxu1 %vm93_vm0, %v1306_v43 }
 0xc27   :  { %3069 = vmatpush3.xpose.msk.msra.mxu1 %vm93_vm0, %v1306_v43 }
 0xc28   :  { %3070 = vmatprep.subr.msk.mxu1 %vm93_vm0, %v1305_v5 }
 0xc2b   :  { %3071 = vmatpush3.xpose.msk.msra.mxu1 %vm93_vm0, %v1305_v5  ;;  %v1715_v5 = vrot.slane %v3831_v9, %v3697_v63 }
 0xc2c   :  { %3072 = vmatprep.subr.msk.mxu1 %vm93_vm0, %v1304_v10 }
 0xc2f   :  { %3073 = vmatpush3.xpose.msk.msra.mxu1 %vm93_vm0, %v1304_v10 }
 0xc30   :  { %3074 = vmatprep.subr.msk.mxu1 %vm93_vm0, %v1303_v51 }
 0xc33   :  { %3075 = vmatpush3.xpose.msk.msra.mxu1 %vm93_vm0, %v1303_v51 }
 0xc34   :  { %3076 = vmatprep.subr.msk.mxu1 %vm93_vm0, %v1302_v53 }
 0xc37   :  { %3077 = vmatpush3.xpose.msk.msra.mxu1 %vm93_vm0, %v1302_v53 }
 0xc38   :  { %3078 = vmatprep.subr.msk.mxu1 %vm93_vm0, %v1301_v55 }
 0xc3b   :  { %3079 = vmatpush3.xpose.msk.msra.mxu1 %vm93_vm0, %v1301_v55 }
 0xc3c   :  { %3080 = vmatprep.subr.msk.mxu1 %vm93_vm0, %v1300_v56 }
 0xc3f   :  { %3081 = vmatpush3.xpose.msk.msra.mxu1 %vm93_vm0, %v1300_v56 }
 0xc40   :  { %3082 = vmatprep.subr.msk.mxu1 %vm93_vm0, %v1299_v58 }
 0xc43   :  { %3083 = vmatpush3.xpose.msk.msra.mxu1 %vm93_vm0, %v1299_v58 }
 0xc46   :  { %3085 = vmatmul.mubr.msk.f32.vlgmr.msra.gmra.mxu1 %vm93_vm0, %v1183_v26 }
 0xd06   :  { %v3086_v57 = vpop.f32.mrf.mxu1 }
 0xd07   :  { %v1526_v61 = vadd.f32 %v3086_v57, %v3587_v50 }
 0xd08   :  { %v1520_v1 = vpop.f32.mrf.mxu1 }
 0xd09   :  { %v1521_v15 = vadd.f32 %v1520_v1, %v3592_v52  ;;  %v1532_v20 = vsel %vm543_vm2, %v1526_v61, -inf }
 0xd0a   :  { %1533 = vmax.xlane.f32.xlu0 %v1532_v20 }
 0xd0b   :  { %v1529_v28 = vsel %vm543_vm2, %v1521_v15, -inf }
 0xd0c   :  { %1530 = vmax.xlane.f32.xlu1 %v1529_v28 }
 0xd1d   :  { %1307 = vrot.lane.b32.xlu1 %v1178_v30, %s3314_s29 }
 0xd20   :  { %1309 = vrot.lane.b32.xlu0 %v1183_v26, %s3314_s29 }
 0xd93   :  { %v1534_v31 = vpop.xlane.xlu0 %1533 }
 0xd94   :  { %v1536_v29 = vsub.f32 %v1526_v61, %v1534_v31 }
 0xd95   :  { %v1531_v27 = vpop.xlane.xlu1 %1530 }
 0xd96   :  { %v1535_v33 = vsub.f32 %v1521_v15, %v1531_v27  ;;  %v1539_v52 = vmul.f32 1.442695, %v1536_v29 }
 0xd97   :  { %v1310_v35 = vpop.permute.xlu0 %1309 }
 0xd98   :  { %v1537_v36 = vmul.f32 1.442695, %v1535_v33  ;;  %3052 = vmatprep.subr.mxu0 %v1310_v35 }
 0xd99   :  { %3053 = vmatpush3.msra.mxu0 %v1310_v35  ;;  %v1308_v50 = vpop.permute.xlu1 %1307 }
 0xd9a   :  { %3287 = vpow2.f32 %v1537_v36  ;;  %3054 = vmatprep.subr.mxu0 %v1308_v50  ;;  %v2634_v36 = vld [vmem:[%s4208_s10 + $0x30] sm:$0xff] }
 0xd9b   :  { %3055 = vmatpush3.msra.mxu0 %v1308_v50  ;;  %3289 = vpow2.f32 %v1539_v52  ;;  %v2633_v50 = vld [vmem:[%s4208_s10 + $0x28] sm:$0xff]  ;;  %v2632_v52 = vld [vmem:[%s4208_s10 + $0x20] sm:$0xff] }
 0xd9c   :  { %3057 = vmatmul.mubr.msk.f32.vlgmr.msra.gmra.mxu0 %vm183_vm1, %v3470_v18  ;;  %3087 = vmatprep.subr.mxu0 %v3603_v0 }
 0xd9d   :  { %3088 = vmatpush3.msra.mxu0 %v3603_v0  ;;  %3059 = vmatprep.mubr.msk.f32.mxu0 %vm183_vm1, %v3475_v19 }
 0xd9e   :  { %3089 = vmatprep.subr.mxu0 %v3608_v3 }
 0xd9f   :  { %3090 = vmatpush3.msra.mxu0 %v3608_v3 }
 0xda0   :  { %3060 = vmatmul.mubr.msk.f32.gmra.mxu0 %vm183_vm1, %v3484_v21  ;;  %3091 = vmatprep.subr.mxu0 %v3619_v4  ;;  %v2629_v21 = vld [vmem:[%s4207_s9 + $0x38] sm:$0xff] }
 0xda1   :  { %3092 = vmatpush3.msra.mxu0 %v3619_v4  ;;  %3062 = vmatprep.mubr.msk.f32.mxu0 %vm183_vm1, %v3489_v22  ;;  %v2628_v22 = vld [vmem:[%s4207_s9 + $0x30] sm:$0xff] }
 0xda2   :  { %3093 = vmatprep.subr.mxu0 %v3626_v11  ;;  %3125 = vmatprep.subr.mxu1 %v2629_v21 }
 0xda3   :  { %3094 = vmatpush3.msra.mxu0 %v3626_v11  ;;  %3126 = vmatpush3.msra.mxu1 %v2629_v21 }
 0xda4   :  { %3063 = vmatmul.mubr.msk.f32.gmra.mxu0 %vm183_vm1, %v3498_v23  ;;  %3095 = vmatprep.subr.mxu0 %v3637_v12 }
 0xda5   :  { %3096 = vmatpush3.msra.mxu0 %v3637_v12  ;;  %3065 = vmatprep.mubr.msk.f32.mxu0 %vm183_vm1, %v3503_v24 }
 0xda6   :  { %3097 = vmatprep.subr.mxu0 %v3644_v13  ;;  %3127 = vmatprep.subr.mxu1 %v2628_v22 }
 0xda7   :  { %v3288_v18 = vpop.eup %3287  ;;  %3098 = vmatpush3.msra.mxu0 %v3644_v13  ;;  %3128 = vmatpush3.msra.mxu1 %v2628_v22 }
 0xda8   :  { %3066 = vmatmul.mubr.msk.f32.gmra.mxu0 %vm183_vm1, %v3512_v25  ;;  %3099 = vmatprep.subr.mxu0 %v3655_v14  ;;  %v3290_v19 = vpop.eup %3289 }
 0xda9   :  { %3100 = vmatpush3.msra.mxu0 %v3655_v14  ;;  %3103 = vmatprep.mubr.msk.f32.mxu0 %vm543_vm2, %v3288_v18 }
 0xdaa   :  { %3101 = vmatprep.subr.mxu0 %v3662_v16 }
 0xdab   :  { %3102 = vmatpush3.msra.mxu0 %v3662_v16 }
 0xdac   :  { %3104 = vmatmul.mubr.msk.f32.vlgmr.msra.gmra.mxu0 %vm543_vm2, %v3290_v19 }
 0xe5c   :  { %v3058_v23 = vpop.f32.mrf.mxu0 }
 0xe5e   :  { %v1379_v24 = vpop.f32.mrf.mxu0 }
 0xe60   :  { %v3061_v25 = vpop.f32.mrf.mxu0 }
 0xe61   :  { %v1421_v39 = vmul.f32 %v3061_v25, %v3550_v42 }
 0xe62   :  { %v1389_v0 = vpop.f32.mrf.mxu0 }
 0xe64   :  { %v3064_v3 = vpop.f32.mrf.mxu0 }
 0xe65   :  { %v1423_v26 = vmul.f32 %v3064_v3, %v3534_v38  ;;  %v1418_v38 = vmul.f32 %v1379_v24, %v3574_v48 }
 0xe66   :  { %v1399_v4 = vpop.f32.mrf.mxu0 }
 0xe67   :  { %v1422_v37 = vmul.f32 %v1399_v4, %v3542_v40 }
 0xe68   :  { %v3067_v11 = vpop.f32.mrf.mxu0 }
 0xe69   :  { %v1425_v12 = vmul.f32 %v3067_v11, %v3521_v32  ;;  %v1420_v32 = vmul.f32 %v1389_v0, %v3558_v44  ;;  %v2627_v44 = vld [vmem:[%s4207_s9 + $0x28] sm:$0xff]  ;;  %v1828_v0 = vrot.slane %v3831_v9, %v842_v59  ;;  %v2653_v59 = vld [vmem:[%s4209_s11 + $0xf8] sm:$0xff] }
 0xe6a   :  { %v1409_v13 = vpop.f32.mrf.mxu0  ;;  %3129 = vmatprep.subr.mxu1 %v2627_v44 }
 0xe6b   :  { %v1424_v14 = vmul.f32 %v1409_v13, %v3526_v34  ;;  %3106 = vmatprep.subr.mxu0 %v1425_v12  ;;  %v1419_v34 = vmul.f32 %v3058_v23, %v3566_v46  ;;  %3130 = vmatpush3.msra.mxu1 %v2627_v44  ;;  %v2626_v46 = vld [vmem:[%s4207_s9 + $0x20] sm:$0xff]  ;;  %v1834_v13 = vrot.slane %v3831_v9, %v848_v60  ;;  %v2652_v60 = vld [vmem:[%s4209_s11 + $0xf0] sm:$0xff]  ;;  %v2641_v44 = vld [vmem:[%s4209_s11 + $0x98] sm:$0xff] }
 0xe6c   :  { %v3105_v16 = vpop.f32.mrf.mxu0  ;;  %3107 = vmatpush3.msra.mxu0 %v1425_v12  ;;  %3131 = vmatprep.subr.mxu1 %v2626_v46 }
 0xe6d   :  { %3108 = vmatprep.subr.mxu0 %v1424_v14  ;;  %3291 = vrcp.f32 %v3105_v16  ;;  %3132 = vmatpush3.msra.mxu1 %v2626_v46  ;;  %v2640_v46 = vld [vmem:[%s4209_s11 + $0x90] sm:$0xff] }
 0xe6e   :  { %v1613_v30 = vpop.f32.mrf.mxu0  ;;  %3109 = vmatpush3.msra.mxu0 %v1424_v14  ;;  %3147 = vmatprep.subr.mxu1 %v2653_v59 }
 0xe6f   :  { %3293 = vrcp.f32 %v1613_v30  ;;  %3110 = vmatprep.subr.mxu0 %v1423_v26  ;;  %v2651_v30 = vld [vmem:[%s4209_s11 + $0xe8] sm:$0xff] }
 0xe70   :  { %3111 = vmatpush3.msra.mxu0 %v1423_v26 }
 0xe71   :  { %3112 = vmatprep.subr.mxu0 %v1422_v37 }
 0xe72   :  { %3113 = vmatpush3.msra.mxu0 %v1422_v37  ;;  %v2650_v37 = vld [vmem:[%s4209_s11 + $0xe0] sm:$0xff] }
 0xe73   :  { %3114 = vmatprep.subr.mxu0 %v1421_v39 }
 0xe74   :  { %3115 = vmatpush3.msra.mxu0 %v1421_v39  ;;  %v2649_v39 = vld [vmem:[%s4209_s11 + $0xd8] sm:$0xff] }
 0xe75   :  { %3116 = vmatprep.subr.mxu0 %v1420_v32 }
 0xe76   :  { %3117 = vmatpush3.msra.mxu0 %v1420_v32  ;;  %v2648_v32 = vld [vmem:[%s4209_s11 + $0xd0] sm:$0xff] }
 0xe77   :  { %3118 = vmatprep.subr.mxu0 %v1419_v34 }
 0xe78   :  { %3119 = vmatpush3.msra.mxu0 %v1419_v34  ;;  %v2647_v34 = vld [vmem:[%s4209_s11 + $0xc8] sm:$0xff] }
 0xe79   :  { %3120 = vmatprep.subr.mxu0 %v1418_v38 }
 0xe7a   :  { %3121 = vmatpush3.msra.mxu0 %v1418_v38  ;;  %v3292_v40 = vpop.eup %3291  ;;  %v2646_v38 = vld [vmem:[%s4209_s11 + $0xc0] sm:$0xff] }
 0xe7b   :  { %v1625_v42 = vmul.f32 %v3292_v40, %v3290_v19  ;;  %v2645_v40 = vld [vmem:[%s4209_s11 + $0xb8] sm:$0xff] }
 0xe7c   :  { %v3294_v41 = vpop.eup %3293 }
 0xe7d   :  { %v1624_v43 = vmul.f32 %v3294_v41, %v3288_v18  ;;  %v2644_v41 = vld [vmem:[%s4209_s11 + $0xb0] sm:$0xff] }
 0xe7f   :  { %3122 = vmatprep.mubr.msk.f32.mxu0 %vm543_vm2, %v1624_v43  ;;  %v2643_v43 = vld [vmem:[%s4209_s11 + $0xa8] sm:$0xff] }
 0xe80   :  { %3123 = vmatmul.mubr.msk.f32.vlgmr.msra.gmra.mxu0 %vm543_vm2, %v1625_v42  ;;  %v2642_v42 = vld [vmem:[%s4209_s11 + $0xa0] sm:$0xff] }
 0xf40   :  { %v3124_v48 = vpop.f32.mrf.mxu0 }
 0xf42   :  { %v1698_v45 = vpop.f32.mrf.mxu0 }
 0xf43   :  { %3133 = vmatprep.mubr.msk.f32.mxu1 %vm93_vm0, %v1698_v45  ;;  %v2638_v45 = vld [vmem:[%s4209_s11 + $0x80] sm:$0xff] }
 0xf44   :  { %3134 = vmatmul.mubr.msk.f32.vlgmr.msra.gmra.mxu1 %vm93_vm0, %v3124_v48  ;;  %v2639_v48 = vld [vmem:[%s4209_s11 + $0x88] sm:$0xff] }
 0xf45   :  { %3148 = vmatpush3.msra.mxu1 %v2653_v59 }
 0xf46   :  { %3149 = vmatprep.subr.mxu1 %v2652_v60 }
 0xf47   :  { %3150 = vmatpush3.msra.mxu1 %v2652_v60 }
 0xf48   :  { %3151 = vmatprep.subr.mxu1 %v2651_v30 }
 0xf49   :  { %3152 = vmatpush3.msra.mxu1 %v2651_v30 }
 0xf4a   :  { %3153 = vmatprep.subr.mxu1 %v2650_v37 }
 0xf4b   :  { %3154 = vmatpush3.msra.mxu1 %v2650_v37  ;;  %v3315_v37 = vmov 0.0  }
 0xf4c   :  { %3155 = vmatprep.subr.mxu1 %v2649_v39 }
 0xf4d   :  { %3156 = vmatpush3.msra.mxu1 %v2649_v39 }
 0xf4e   :  { %3157 = vmatprep.subr.mxu1 %v2648_v32 }
 0xf4f   :  { %3158 = vmatpush3.msra.mxu1 %v2648_v32 }
 0xf50   :  { %3159 = vmatprep.subr.mxu1 %v2647_v34 }
 0xf51   :  { %3160 = vmatpush3.msra.mxu1 %v2647_v34 }
 0xf52   :  { %3161 = vmatprep.subr.mxu1 %v2646_v38 }
 0xf53   :  { %3162 = vmatpush3.msra.mxu1 %v2646_v38 }
 0xf54   :  { %3163 = vmatprep.subr.mxu1 %v2645_v40 }
 0xf55   :  { %3164 = vmatpush3.msra.mxu1 %v2645_v40 }
 0xf56   :  { %3165 = vmatprep.subr.mxu1 %v2644_v41 }
 0xf57   :  { %3166 = vmatpush3.msra.mxu1 %v2644_v41  ;;  %v2072_v41 = vrot.slane %v3831_v9, %v1084_v47  ;;  %v2161_v47 = vld [vmem:[%s4211_s13 + $0x20] sm:$0xf] }
 0xf58   :  { %3167 = vmatprep.subr.mxu1 %v2643_v43 }
 0xf59   :  { %3168 = vmatpush3.msra.mxu1 %v2643_v43 }
 0xf5a   :  { %3169 = vmatprep.subr.mxu1 %v2642_v42 }
 0xf5b   :  { %3170 = vmatpush3.msra.mxu1 %v2642_v42 }
 0xf5c   :  { %3171 = vmatprep.subr.mxu1 %v2641_v44 }
 0xf5d   :  { %3172 = vmatpush3.msra.mxu1 %v2641_v44  ;;  %v2078_v44 = vrot.slane %v3831_v9, %v1090_v49  ;;  %v2159_v49 = vld [vmem:[%s4211_s13 + $0x18] sm:$0xff] }
 0xf5e   :  { %3173 = vmatprep.subr.mxu1 %v2640_v46 }
 0xf5f   :  { %3174 = vmatpush3.msra.mxu1 %v2640_v46 }
 0xf60   :  { %3175 = vmatprep.subr.mxu1 %v2639_v48 }
 0xf61   :  { %3176 = vmatpush3.msra.mxu1 %v2639_v48 }
 0xf62   :  { %3177 = vmatprep.subr.mxu1 %v2638_v45 }
 0xf63   :  { %3178 = vmatpush3.msra.mxu1 %v2638_v45 }
 0xf64   :  { %3240 = vmatprep.subr.mxu1 %v3315_v37 }
0x1004   :  { %v3135_v10 = vpop.f32.mrf.mxu1 }
0x1005   :  { %v1794_v51 = vadd.f32 %v3135_v10, %v1715_v5 }
0x1006   :  { %v1788_v53 = vpop.f32.mrf.mxu1 }
0x1007   :  { %v1789_v55 = vadd.f32 %v1788_v53, %v1715_v5  ;;  %v1798_v56 = vadd.f32 %v1794_v51, %v3822_v17  ;;  %v1845_v5 = vrot.slane %v3831_v9, %v3784_v54 }
0x1009   :  { %v1802_v58 = vsel %vm93_vm0, %v1798_v56, 0.0  ;;  %v1797_v57 = vadd.f32 %v1789_v55, %v3818_v62  ;;  %v2635_v62 = vld [vmem:[%s4208_s10 + $0x38] sm:$0xff] }
0x100a   :  { %1803 = vadd.xlane.f32.xlu0 %v1802_v58  ;;  %3136 = vmatprep.subr.mxu0 %v2635_v62 }
0x100b   :  { %v1799_v61 = vsel %vm93_vm0, %v1797_v57, 0.0  ;;  %3137 = vmatpush3.msra.mxu0 %v2635_v62 }
0x100c   :  { %1800 = vadd.xlane.f32.xlu1 %v1799_v61  ;;  %3138 = vmatprep.subr.mxu0 %v2634_v36 }
0x100d   :  { %3139 = vmatpush3.msra.mxu0 %v2634_v36 }
0x100e   :  { %3140 = vmatprep.subr.mxu0 %v2633_v50 }
0x100f   :  { %3141 = vmatpush3.msra.mxu0 %v2633_v50 }
0x1010   :  { %3142 = vmatprep.subr.mxu0 %v2632_v52 }
0x1011   :  { %3143 = vmatpush3.msra.mxu0 %v2632_v52 }
0x1012   :  { %3182 = vmatprep.subr.mxu0 %v3315_v37 }
0x1093   :  { %v1804_v1 = vpop.xlane.xlu0 %1803 }
0x1094   :  { %v1806_v15 = vmul.f32 0.03125, %v1804_v1 }
0x1095   :  { %v1801_v20 = vpop.xlane.xlu1 %1800 }
0x1096   :  { %v1808_v28 = vsub.f32 %v1798_v56, %v1806_v15  ;;  %v1805_v31 = vmul.f32 0.03125, %v1801_v20 }
0x1098   :  { %v1807_v27 = vsub.f32 %v1797_v57, %v1805_v31  ;;  %v1810_v29 = vmul.f32 %v1808_v28, %v1808_v28 }
0x109a   :  { %v1814_v33 = vsel %vm93_vm0, %v1810_v29, 0.0  ;;  %v1809_v35 = vmul.f32 %v1807_v27, %v1807_v27 }
0x109b   :  { %1815 = vadd.xlane.f32.xlu1 %v1814_v33 }
0x109c   :  { %v1811_v17 = vsel %vm93_vm0, %v1809_v35, 0.0 }
0x109d   :  { %1812 = vadd.xlane.f32.xlu0 %v1811_v17 }
0x1124   :  { %v1816_v18 = vpop.xlane.xlu1 %1815 }
0x1125   :  { %v1818_v19 = vmul.f32 0.03125, %v1816_v18  ;;  %v1965_v18 = vrot.slane %v3831_v9, %v977_v2  ;;  %v2158_v9 = vld [vmem:[%s4211_s13 + $0x10] sm:$0xff] }
0x1126   :  { %v1813_v21 = vpop.xlane.xlu0 %1812 }
0x1127   :  { %v1820_v22 = vadd.f32 1e-05, %v1818_v19  ;;  %v1817_v23 = vmul.f32 0.03125, %v1813_v21 }
0x1129   :  { %3295 = vrsqrt.f32 %v1820_v22  ;;  %v1819_v24 = vadd.f32 1e-05, %v1817_v23 }
0x112b   :  { %3297 = vrsqrt.f32 %v1819_v24 }
0x1136   :  { %v3296_v25 = vpop.eup %3295 }
0x1137   :  { %v1824_v3 = vmul.f32 %v3296_v25, %v1808_v28 }
0x1138   :  { %v3298_v4 = vpop.eup %3297 }
0x1139   :  { %v1823_v11 = vmul.f32 %v3298_v4, %v1807_v27  ;;  %v1830_v12 = vmul.f32 %v1828_v0, %v1824_v3 }
0x113b   :  { %v1829_v14 = vmul.f32 %v1828_v0, %v1823_v11  ;;  %v3969_v26 = vadd.f32 %v1834_v13, %v1830_v12 }
0x113d   :  { %v3967_v16 = vadd.f32 %v1834_v13, %v1829_v14 }
0x113f   :  { %3144 = vmatprep.mubr.msk.f32.mxu0 %vm93_vm0, %v3967_v16 }
0x1140   :  { %3145 = vmatmul.mubr.msk.f32.vlgmr.msra.gmra.mxu0 %vm93_vm0, %v3969_v26 }
0x1141   :  { %3186 = vmatprep.mubr.msk.f32.mxu0 %vm3316_vm3, %v3315_v37 }
0x1200   :  { %v3146_v10 = vpop.f32.mrf.mxu0 }
0x1201   :  { %v1924_v51 = vadd.f32 %v3146_v10, %v1845_v5 }
0x1202   :  { %v1918_v53 = vpop.f32.mrf.mxu0 }
0x1203   :  { %v1930_v55 = vmul.f32 0.044715, %v1924_v51  ;;  %v1919_v56 = vadd.f32 %v1918_v53, %v1845_v5  ;;  %v1928_v36 = vmul.f32 0.5, %v1924_v51  ;;  %v2081_v53 = vld [vmem:[%s4210_s7] sm:$0x3] }
0x1205   :  { %v1932_v58 = vmul.f32 %v1930_v55, %v1924_v51  ;;  %v1929_v57 = vmul.f32 0.044715, %v1919_v56  ;;  %v1927_v17 = vmul.f32 0.5, %v1919_v56  ;;  %v2157_v55 = vld [vmem:[%s4211_s13 + $0x8] sm:$0xff] }
0x1207   :  { %v1934_v61 = vmul.f32 %v1932_v58, %v1924_v51  ;;  %v1931_v1 = vmul.f32 %v1929_v57, %v1919_v56  ;;  %v2336_v58 = vld [vmem:[%s4213_s14 + $0x78] sm:$0xff] }
0x1209   :  { %v1936_v15 = vadd.f32 %v1934_v61, %v1924_v51  ;;  %v1933_v20 = vmul.f32 %v1931_v1, %v1919_v56  ;;  %v2335_v61 = vld [vmem:[%s4213_s14 + $0x70] sm:$0xff] }
0x120b   :  { %v1935_v28 = vadd.f32 %v1933_v20, %v1919_v56  ;;  %v1938_v31 = vmul.f32 0.7978846, %v1936_v15  ;;  %v2156_v56 = vld [vmem:[%s4211_s13] sm:$0xff]  ;;  %v2334_v15 = vld [vmem:[%s4213_s14 + $0x68] sm:$0xff] }
0x120d   :  { %v1937_v27 = vmul.f32 0.7978846, %v1935_v28  ;;  %3299 = vtanh.f32 %v1938_v31  ;;  %v2333_v28 = vld [vmem:[%s4213_s14 + $0x60] sm:$0xff] }
0x120f   :  { %3301 = vtanh.f32 %v1937_v27  ;;  %v2332_v27 = vld [vmem:[%s4213_s14 + $0x58] sm:$0xff] }
0x121a   :  { %v3300_v29 = vpop.eup %3299 }
0x121b   :  { %v1942_v35 = vadd.f32 1.0, %v3300_v29  ;;  %v2331_v29 = vld [vmem:[%s4213_s14 + $0x50] sm:$0xff] }
0x121c   :  { %v3302_v33 = vpop.eup %3301 }
0x121d   :  { %v1941_v62 = vadd.f32 1.0, %v3302_v33  ;;  %v1944_v52 = vmul.f32 %v1942_v35, %v1928_v36  ;;  %v2330_v33 = vld [vmem:[%s4213_s14 + $0x48] sm:$0xff]  ;;  %v2329_v35 = vld [vmem:[%s4213_s14 + $0x40] sm:$0xff] }
0x121e   :  { %v2326_v36 = vld [vmem:[%s4213_s14 + $0x28] sm:$0xff] }
0x121f   :  { %v1943_v50 = vmul.f32 %v1941_v62, %v1927_v17  ;;  %v2328_v17 = vld [vmem:[%s4213_s14 + $0x38] sm:$0xff]  ;;  %v2327_v62 = vld [vmem:[%s4213_s14 + $0x30] sm:$0xff] }
0x1221   :  { %3179 = vmatprep.mubr.f32.mxu1 %v1943_v50  ;;  %v2325_v50 = vld [vmem:[%s4213_s14 + $0x20] sm:$0xff] }
0x1222   :  { %3180 = vmatmul.mubr.f32.vlgmr.msra.gmra.mxu1 %v1944_v52  ;;  %v2324_v52 = vld [vmem:[%s4213_s14 + $0x18] sm:$0xff] }
0x1223   :  { %3256 = vmatprep.mubr.msk.f32.mxu1 %vm3316_vm3, %v3315_v37 }
0x12e2   :  { %v3181_v19 = vpop.f32.mrf.mxu1 }
0x12e3   :  { %v2038_v21 = vadd.f32 %v3181_v19, %v1965_v18  ;;  %v2322_v19 = vld [vmem:[%s4213_s14 + $0x8] sm:$0xff] }
0x12e4   :  { %v2032_v22 = vpop.f32.mrf.mxu1 }
0x12e5   :  { %v2033_v23 = vadd.f32 %v2032_v22, %v1965_v18  ;;  %v2042_v24 = vadd.f32 %v2038_v21, %v3969_v26  ;;  %v2323_v18 = vld [vmem:[%s4213_s14 + $0x10] sm:$0xff]  ;;  %v2321_v21 = vld [vmem:[%s4213_s14] sm:$0xff]  ;;  %v2419_v22 = vld [vmem:[%s4214_s15 + $0x38] sm:$0xff] }
0x12e6   :  { %3241 = vmatpush3.msra.mxu1 %v2419_v22 }
0x12e7   :  { %v2046_v25 = vsel %vm93_vm0, %v2042_v24, 0.0  ;;  %v2041_v0 = vadd.f32 %v2033_v23, %v3967_v16  ;;  %v2418_v23 = vld [vmem:[%s4214_s15 + $0x30] sm:$0xff]  ;;  %3242 = vmatprep.subr.mxu1 %v3315_v37 }
0x12e8   :  { %2047 = vadd.xlane.f32.xlu0 %v2046_v25  ;;  %3243 = vmatpush3.msra.mxu1 %v2418_v23  ;;  %v2416_v25 = vld [vmem:[%s4214_s15 + $0x20] sm:$0xff] }
0x12e9   :  { %v2043_v3 = vsel %vm93_vm0, %v2041_v0, 0.0  ;;  %3244 = vmatprep.subr.mxu1 %v3315_v37 }
0x12ea   :  { %2044 = vadd.xlane.f32.xlu1 %v2043_v3  ;;  %v2155_v3 = vld [vmem:[%s4215_s16] sm:$0x7] }
0x1371   :  { %v2048_v4 = vpop.xlane.xlu0 %2047 }
0x1372   :  { %v2050_v11 = vmul.f32 0.03125, %v2048_v4  ;;  %v2316_v4 = vrot.slane %v2155_v3, %v3439_v8  ;;  %v2413_v8 = vld [vmem:[%s4214_s15 + $0x8] sm:$0xff] }
0x1373   :  { %v2045_v12 = vpop.xlane.xlu1 %2044 }
0x1374   :  { %v2052_v13 = vsub.f32 %v2042_v24, %v2050_v11  ;;  %v2049_v14 = vmul.f32 0.03125, %v2045_v12  ;;  %v2417_v24 = vld [vmem:[%s4214_s15 + $0x28] sm:$0xff] }
0x1375   :  { %3245 = vmatpush3.msra.mxu1 %v2417_v24 }
0x1376   :  { %v2051_v2 = vsub.f32 %v2041_v0, %v2049_v14  ;;  %v2054_v59 = vmul.f32 %v2052_v13, %v2052_v13  ;;  %3246 = vmatprep.subr.mxu1 %v3315_v37  ;;  %v2415_v0 = vld [vmem:[%s4214_s15 + $0x18] sm:$0xff] }
0x1377   :  { %3247 = vmatpush3.msra.mxu1 %v2416_v25 }
0x1378   :  { %v2058_v60 = vsel %vm93_vm0, %v2054_v59, 0.0  ;;  %v2053_v30 = vmul.f32 %v2051_v2, %v2051_v2  ;;  %3248 = vmatprep.subr.mxu1 %v3315_v37 }
0x1379   :  { %2059 = vadd.xlane.f32.xlu0 %v2058_v60  ;;  %3249 = vmatpush3.msra.mxu1 %v2415_v0  ;;  %v2414_v60 = vld [vmem:[%s4214_s15 + $0x10] sm:$0xff] }
0x137a   :  { %v2055_v26 = vsel %vm93_vm0, %v2053_v30, 0.0  ;;  %3250 = vmatprep.subr.mxu1 %v3315_v37  ;;  %v2412_v30 = vld [vmem:[%s4214_s15] sm:$0xff] }
0x137b   :  { %2056 = vadd.xlane.f32.xlu1 %v2055_v26  ;;  %3251 = vmatpush3.msra.mxu1 %v2414_v60  ;;  %v2340_v26 = vrot.slane %v2155_v3, %v3784_v54  ;;  %v3317_v54 = vmov 0  }
0x137c   :  { %3252 = vmatprep.subr.mxu1 %v3315_v37  ;;  %3265 = vset.pattern.permute.xlu0 %v3317_v54 }
0x137d   :  { %3253 = vmatpush3.msra.mxu1 %v2413_v8  ;;  %3266 = vset.pattern.permute.xlu1 %v3317_v54 }
0x137e   :  { %3254 = vmatprep.subr.mxu1 %v3315_v37 }
0x137f   :  { %3255 = vmatpush3.msra.mxu1 %v2412_v30 }
0x1402   :  { %v2060_v16 = vpop.xlane.xlu0 %2059 }
0x1403   :  { %v2062_v39 = vmul.f32 0.03125, %v2060_v16 }
0x1404   :  { %v2057_v32 = vpop.xlane.xlu1 %2056 }
0x1405   :  { %v2064_v34 = vadd.f32 1e-05, %v2062_v39  ;;  %v2061_v38 = vmul.f32 0.03125, %v2057_v32 }
0x1407   :  { %3303 = vrsqrt.f32 %v2064_v34  ;;  %v2063_v40 = vadd.f32 1e-05, %v2061_v38  ;;  %v2423_v38 = vrot.slane %v2155_v3, %v3697_v63 }
0x1409   :  { %3305 = vrsqrt.f32 %v2063_v40 }
0x1414   :  { %v3304_v43 = vpop.eup %3303 }
0x1415   :  { %v2068_v42 = vmul.f32 %v3304_v43, %v2052_v13 }
0x1416   :  { %v3306_v46 = vpop.eup %3305 }
0x1417   :  { %v2074_v48 = vmul.f32 %v2072_v41, %v2068_v42  ;;  %v2067_v45 = vmul.f32 %v3306_v46, %v2051_v2 }
0x1419   :  { %v2080_v5 = vadd.f32 %v2078_v44, %v2074_v48  ;;  %v2073_v10 = vmul.f32 %v2072_v41, %v2067_v45 }
0x141b   :  { %3183 = vmatpush3.msra.mxu0 %v2080_v5  ;;  %v2079_v51 = vadd.f32 %v2078_v44, %v2073_v10  ;;  %v2497_v44 = vld [vmem:[%s4217_s3] sm:$0x3] }
0x141c   :  { %3184 = vmatprep.subr.mxu0 %v3315_v37  ;;  %vm2522_vm9 = vcmp.eq.s32.totalorder %v2497_v44, 1 }
0x141d   :  { %3185 = vmatpush3.msra.mxu0 %v2079_v51  ;;  %v2511_v51 = vand.u32 127, %v89_v6 }
0x141e   :  { %3187 = vmatmul.mubr.msk.f32.vlgmr.msra.gmra.mxu0 %vm183_vm1, %v2081_v53  ;;  %3189 = vmatprep.subr.mxu0 %v3315_v37 }
0x141f   :  { %3190 = vmatpush3.msk.msra.mxu0 %vm2166_vm4, %v2161_v47  ;;  %3191 = vmatprep.mubr.msk.f32.mxu0 %vm3316_vm3, %v3315_v37 }
0x1420   :  { %3194 = vmatprep.subr.mxu0 %v3315_v37 }
0x1422   :  { %3192 = vmatmul.mubr.msk.f32.vlgmr.msra.gmra.mxu0 %vm2162_vm5, %v2160_v7 }
0x1423   :  { %3195 = vmatpush3.msra.mxu0 %v2159_v49  ;;  %3202 = vmatprep.mubr.msk.f32.mxu0 %vm3316_vm3, %v3315_v37 }
0x1424   :  { %3196 = vmatprep.subr.mxu0 %v3315_v37 }
0x1425   :  { %3197 = vmatpush3.msra.mxu0 %v2158_v9 }
0x1426   :  { %3198 = vmatprep.subr.mxu0 %v3315_v37 }
0x1427   :  { %3199 = vmatpush3.msra.mxu0 %v2157_v55 }
0x1428   :  { %3200 = vmatprep.subr.mxu0 %v3315_v37 }
0x1429   :  { %3201 = vmatpush3.msra.mxu0 %v2156_v56 }
0x142a   :  { %3205 = vmatprep.subr.mxu0 %v3315_v37 }
0x14de   :  { %v2151_v57 = vpop.f32.mrf.mxu0 }
0x14df   :  { %3203 = vmatmul.mubr.msk.f32.vlgmr.msra.gmra.mxu0 %vm93_vm0, %v2151_v57 }
0x14e0   :  { %v3188_v1 = vpop.f32.mrf.mxu0  ;;  %3206 = vmatpush3.msra.mxu0 %v2336_v58  ;;  %3237 = vmatprep.mubr.msk.f32.mxu0 %vm3316_vm3, %v3315_v37 }
0x14e1   :  { %3207 = vmatprep.subr.mxu0 %v3315_v37 }
0x14e2   :  { %3208 = vmatpush3.msra.mxu0 %v2335_v61  ;;  %v4092_v20 = vpop.f32.mrf.mxu0  ;;  %v3318_v61 = vmov 0.25  }
0x14e3   :  { %3209 = vmatprep.subr.mxu0 %v3315_v37  ;;  %v2523_v1 = vsel %vm2522_vm9, 0.75, %v3318_v61 }
0x14e4   :  { %3210 = vmatpush3.msra.mxu0 %v2334_v15  ;;  %v3193_v31 = vpop.f32.mrf.mxu0  ;;  %v2525_v15 = vsub.f32 0.0, %v2523_v1 }
0x14e5   :  { %3211 = vmatprep.subr.mxu0 %v3315_v37 }
0x14e6   :  { %3212 = vmatpush3.msra.mxu0 %v2333_v28 }
0x14e7   :  { %3213 = vmatprep.subr.mxu0 %v3315_v37 }
0x14e8   :  { %3214 = vmatpush3.msra.mxu0 %v2332_v27 }
0x14e9   :  { %3215 = vmatprep.subr.mxu0 %v3315_v37 }
0x14ea   :  { %3216 = vmatpush3.msra.mxu0 %v2331_v29 }
0x14eb   :  { %3217 = vmatprep.subr.mxu0 %v3315_v37 }
0x14ec   :  { %3218 = vmatpush3.msra.mxu0 %v2330_v33 }
0x14ed   :  { %3219 = vmatprep.subr.mxu0 %v3315_v37 }
0x14ee   :  { %3220 = vmatpush3.msra.mxu0 %v2329_v35 }
0x14ef   :  { %3221 = vmatprep.subr.mxu0 %v3315_v37 }
0x14f0   :  { %3222 = vmatpush3.msra.mxu0 %v2328_v17 }
0x14f1   :  { %3223 = vmatprep.subr.mxu0 %v3315_v37 }
0x14f2   :  { %3224 = vmatpush3.msra.mxu0 %v2327_v62 }
0x14f3   :  { %3225 = vmatprep.subr.mxu0 %v3315_v37 }
0x14f4   :  { %3226 = vmatpush3.msra.mxu0 %v2326_v36 }
0x14f5   :  { %3227 = vmatprep.subr.mxu0 %v3315_v37 }
0x14f6   :  { %3228 = vmatpush3.msra.mxu0 %v2325_v50 }
0x14f7   :  { %3229 = vmatprep.subr.mxu0 %v3315_v37 }
0x14f8   :  { %3230 = vmatpush3.msra.mxu0 %v2324_v52 }
0x14f9   :  { %3231 = vmatprep.subr.mxu0 %v3315_v37 }
0x14fa   :  { %3232 = vmatpush3.msra.mxu0 %v2323_v18 }
0x14fb   :  { %3233 = vmatprep.subr.mxu0 %v3315_v37 }
0x14fc   :  { %3234 = vmatpush3.msra.mxu0 %v2322_v19 }
0x14fd   :  { %3235 = vmatprep.subr.mxu0 %v3315_v37 }
0x14fe   :  { %3236 = vmatpush3.msra.mxu0 %v2321_v21 }
0x159f   :  { %v2309_v11 = vpop.f32.mrf.mxu0 }
0x15a0   :  { %v2310_v12 = vadd.f32 %v2309_v11, %v4092_v20 }
0x15a1   :  { %v3204_v13 = vpop.f32.mrf.mxu0 }
0x15a2   :  { %v2317_v14 = vadd.f32 %v2316_v4, %v2310_v12 }
0x15a4   :  { %v2319_v2 = vmul.f32 0.1, %v2317_v14  ;;  %vm2318_vm6 = vcmp.gt.f32.partialorder %v2317_v14, 0.0 }
0x15a6   :  { %v2320_v59 = vsel %vm2318_vm6, %v2317_v14, %v2319_v2 }
0x15a7   :  { %3238 = vmatmul.mubr.f32.vlgmr.msra.gmra.mxu0 %v2320_v59 }
0x1667   :  { %v2407_v16 = vpop.f32.mrf.mxu0 }
0x1668   :  { %v2408_v39 = vadd.f32 %v2407_v16, %v2340_v26 }
0x1669   :  { %v3239_v32 = vpop.f32.mrf.mxu0 }
0x166a   :  { %v2411_v34 = vmax.f32 %v2408_v39, 0.0 }
0x166c   :  { %3257 = vmatmul.mubr.msk.f32.vlgmr.msra.gmra.mxu1 %vm543_vm2, %v2411_v34 }
0x172c   :  { %v2493_v40 = vpop.f32.mrf.mxu1 }
0x172d   :  { %v2494_v41 = vadd.f32 %v2493_v40, %v2423_v38 }
0x172e   :  { %v3258_v43 = vpop.f32.mrf.mxu1 }
0x172f   :  { %v2499_v42 = vsel %vm2498_vm7, %v2494_v41, -inf  ;;  %2542 = vst [vmem:[%s4216_s17] sm:$0x3] %v2494_v41 }
0x1730   :  { %2500 = vmax.xlane.f32.xlu0 %v2499_v42 }
0x1746   :  { %2513 = vperm.xlu0 %3265, %v2497_v44  }
0x17b9   :  { %v2501_v63 = vpop.xlane.xlu0 %2500 }
0x17ba   :  { %v2502_v46 = vsub.f32 %v2494_v41, %v2501_v63 }
0x17bc   :  { %v2503_v48 = vmul.f32 1.442695, %v2502_v46 }
0x17be   :  { %3307 = vpow2.f32 %v2503_v48 }
0x17c1   :  { %v2514_v53 = vpop.permute.xlu0 %2513 }
0x17c2   :  { %vm2515_vm8 = vcmp.eq.s32.totalorder %v2511_v51, %v2514_v53 }
0x17c3   :  { %v2659_v7 = vsel %vm2515_vm8, 1.0, %v3315_v37 }
0x17cb   :  { %v3308_v45 = vpop.eup %3307 }
0x17cc   :  { %v2505_v5 = vsel %vm2498_vm7, %v3308_v45, 0.0 }
0x17cd   :  { %2506 = vadd.xlane.f32.xlu1 %v2505_v5 }
0x1856   :  { %v2507_v10 = vpop.xlane.xlu1 %2506 }
0x1857   :  { %3309 = vrcp.f32 %v2507_v10 }
0x1864   :  { %v3310_v47 = vpop.eup %3309 }
0x1865   :  { %v2509_v49 = vmul.f32 %v3310_v47, %v3308_v45 }
0x1867   :  { %v2518_v9 = vmul.f32 %v2659_v7, %v2509_v49 }
0x1869   :  { %v2519_v55 = vsel %vm2498_vm7, %v2518_v9, 0.0 }
0x186a   :  { %2520 = vadd.xlane.f32.xlu1 %v2519_v55 }
0x18f3   :  { %v2521_v56 = vpop.xlane.xlu1 %2520 }
0x18f4   :  { %v2528_v58 = vadd.f32 1e-08, %v2521_v56  ;;  %v2524_v57 = vsub.f32 1.0, %v2521_v56 }
0x18f6   :  { %3311 = vlog2.f32 %v2528_v58  ;;  %v2526_v20 = vmul.f32 %v2524_v57, %v2524_v57 }
0x18f8   :  { %v2527_v28 = vmul.f32 %v2526_v20, %v2525_v15 }
0x1903   :  { %v3312_v6 = vpop.eup %3311 }
0x1904   :  { %v2530_v31 = vmul.f32 0.6931472, %v3312_v6 }
0x1906   :  { %v2531_v27 = vmul.f32 %v2530_v31, %v2527_v28 }
0x1908   :  { %v2533_v37 = vsel %vm2532_vm10, %v2531_v27, 0.0 }
0x1909   :  { %v2534_v29 = vrot.slane %v2533_v37, 4 }
0x190b   :  { %v2535_v33 = vadd.f32 %v2534_v29, %v2533_v37 }
0x190d   :  { %v2536_v35 = vrot.slane %v2535_v33, 2 }
0x190f   :  { %v2537_v17 = vadd.f32 %v2536_v35, %v2535_v33 }
0x1911   :  { %v2538_v62 = vrot.slane %v2537_v17, 1 }
0x1913   :  { %v2539_v36 = vadd.f32 %v2538_v62, %v2537_v17 }
0x1915   :  { %v2541_v50 = vmul.f32 0.5, %v2539_v36 }
0x1917   :  { %2545 = vperm.xlu1 %3266, %v2541_v50  }
0x1992   :  { %v2546_v52 = vpop.permute.xlu1 %2545 }
0x1993   :  { %2548 = vst [vmem:[%s4216_s17 + $0x2] sm:$0x3f] %v2546_v52 }

</bundles_post_ra>
